<compile_context>
chip_gen: v7x
topology: tpu7x:2x2x1
jax: 0.10.0
libtpu: 0.0.40
codegen_flags: <defaults>
</compile_context>

<pallas_src>
import functools

import jax
import jax.numpy as jnp
from jax.experimental import pallas as pl
from jax.experimental.pallas import tpu as pltpu


def _round_up(x, m):
    return -(-x // m) * m


def conv_stats_kernel(x_ref, w_ref, y_ref, stats_ref, xp_ref, patch_ref,
                      *, KH, KW, pad, off, Ho, Wo, Cout, h_chunk):
    """Per-image conv (im2col, chunked bf16 MXU matmuls) + fused BN sum/sumsq."""
    _, H, W, Cin = x_ref.shape
    Kdim, Coutp = w_ref.shape
    scr_h, scr_w, _ = xp_ref.shape

    # In-kernel zero halo: zero ONLY the border strips; the interior is fully
    # overwritten by the image store below.  Kept per-grid-step (megacore-safe).
    if pad > 0:
        zrow = jnp.zeros((pad, scr_w, Cin), xp_ref.dtype)
        xp_ref[0:pad, :, :] = zrow                       # top halo rows
        xp_ref[pad + H:pad + H + pad, :, :] = zrow       # bottom halo rows
    left = off + pad
    if left > 0:
        xp_ref[:, 0:left, :] = jnp.zeros((scr_h, left, Cin), xp_ref.dtype)
    right = scr_w - (off + pad + W)
    if right > 0:
        xp_ref[:, off + pad + W:scr_w, :] = jnp.zeros((scr_h, right, Cin),
                                                      xp_ref.dtype)

    # Image store at a bf16-sublane-aligned column offset ((off+pad) % 16 == 0).
    xp_ref[pad:pad + H, off + pad:off + pad + W, :] = x_ref[0]

    # im2col (bf16): tap (kh, kw) contributes Cin contiguous lanes of the patch.
    # NOTE: with tiny Cin (4 here) these copies use few lanes; fold Cin into the
    # lane dim for first-layer shapes — efficient as-is once Cin >= 32.
    for kh in range(KH):
        for kw in range(KW):
            t = kh * KW + kw
            patch_ref[:, :, t * Cin:(t + 1) * Cin] = (
                xp_ref[kh:kh + Ho, off + kw:off + kw + Wo, :])

    # Chunked MXU matmul + fused BatchNorm partial statistics.  Working on
    # h_chunk output rows (h_chunk*Wo matmul rows) at a time keeps acc and
    # acc*acc well inside the 64-vreg file (no spills), and the f32 Coutp-wide
    # accumulator never touches HBM.
    csum = jnp.zeros((1, Coutp), jnp.float32)
    cssq = jnp.zeros((1, Coutp), jnp.float32)
    for c in range(Ho // h_chunk):
        blk = patch_ref[c * h_chunk:(c + 1) * h_chunk].reshape(h_chunk * Wo, Kdim)
        acc = jnp.dot(blk, w_ref[...], preferred_element_type=jnp.float32)
        # Only the real channels go to HBM, in bf16.
        y_ref[0, c * h_chunk * Wo:(c + 1) * h_chunk * Wo, :] = (
            acc[:, :Cout].astype(y_ref.dtype))
        csum = csum + jnp.sum(acc, axis=0, keepdims=True)
        cssq = cssq + jnp.sum(acc * acc, axis=0, keepdims=True)

    stats_ref[0, 0:1, :] = csum
    stats_ref[0, 1:2, :] = cssq


def bn_lrelu_kernel(y_ref, scale_ref, shift_ref, o_ref, *, neg_slope):
    """y * scale + shift followed by LeakyReLU; bf16 in, f32 compute/out."""
    v = y_ref[0].astype(jnp.float32) * scale_ref[...] + shift_ref[...]
    o_ref[0] = jnp.where(v > 0, v, neg_slope * v)


def cnn_block(x_nchw, w_oihw, gamma, beta, *, stride=1, padding=1, eps=1e-5,
              neg_slope=0.1):
    """Forward pass of CNNBlock (PyTorch NCHW in / NCHW out)."""
    assert stride == 1, "TODO(synk): stride != 1 not implemented"
    N, Cin, H, W = x_nchw.shape
    Cout, _, KH, KW = w_oihw.shape
    Ho = H + 2 * padding - KH + 1
    Wo = W + 2 * padding - KW + 1
    rows = Ho * Wo
    Kdim = KH * KW * Cin
    Coutp = max(128, _round_up(Cout, 128))   # lane-dense MXU N dim (vregs only)

    # Scratch geometry: the image lives at scratch column (off + padding),
    # chosen 16-aligned for bf16 sublane packing; width rounded to the tile.
    off = (-padding) % 16
    scr_w = _round_up(off + W + 2 * padding, 16)
    scr_h = H + 2 * padding

    # Matmul / stats chunk: ~64 matmul rows per slab, whole output rows.
    h_chunk = max(1, 64 // max(Wo, 1))
    while Ho % h_chunk:
        h_chunk -= 1

    # Boundary layout glue (NCHW -> NHWC bf16 activations, OIHW -> im2col matrix).
    x_nhwc = jnp.transpose(x_nchw, (0, 2, 3, 1)).astype(jnp.bfloat16)
    wmat = jnp.transpose(w_oihw, (2, 3, 1, 0)).reshape(Kdim, Cout)
    wmat = jnp.pad(wmat, ((0, 0), (0, Coutp - Cout))).astype(jnp.bfloat16)

    # ---- Pass 1: conv + per-image BN partial statistics --------------------
    conv_kernel = functools.partial(conv_stats_kernel, KH=KH, KW=KW, pad=padding,
                                    off=off, Ho=Ho, Wo=Wo, Cout=Cout,
                                    h_chunk=h_chunk)
    cost1 = pl.CostEstimate(
        flops=2 * N * rows * Kdim * Coutp + 3 * N * rows * Coutp,
        transcendentals=0,
        bytes_accessed=(x_nhwc.size * 2 + wmat.size * 2
                        + N * rows * Cout * 2 + N * 2 * Coutp * 4))
    y, stats = pl.pallas_call(
        conv_kernel,
        grid=(N,),
        in_specs=[
            pl.BlockSpec((1, H, W, Cin), lambda n: (n, 0, 0, 0)),
            pl.BlockSpec((Kdim, Coutp), lambda n: (0, 0)),
        ],
        out_specs=(
            pl.BlockSpec((1, rows, Cout), lambda n: (n, 0, 0)),
            pl.BlockSpec((1, 2, Coutp), lambda n: (n, 0, 0)),
        ),
        out_shape=(
            jax.ShapeDtypeStruct((N, rows, Cout), jnp.bfloat16),
            jax.ShapeDtypeStruct((N, 2, Coutp), jnp.float32),
        ),
        scratch_shapes=[
            pltpu.VMEM((scr_h, scr_w, Cin), jnp.bfloat16),   # zero-halo image
            pltpu.VMEM((Ho, Wo, Kdim), jnp.bfloat16),        # im2col patch
        ],
        compiler_params=pltpu.CompilerParams(
            dimension_semantics=("parallel",),
            vmem_limit_bytes=64 * 1024 * 1024),
        cost_estimate=cost1,
    )(x_nhwc, wmat)

    # ---- Tiny glue: global BN statistics + affine fold (per-channel, f32) --
    cnt = jnp.float32(N * rows)
    ch_sum = jnp.sum(stats[:, 0, :Cout], axis=0)
    ch_ssq = jnp.sum(stats[:, 1, :Cout], axis=0)
    mean = ch_sum / cnt
    var = jnp.maximum(ch_ssq / cnt - mean * mean, 0.0)      # biased variance
    inv_std = jax.lax.rsqrt(var + eps)
    g = gamma.astype(jnp.float32)
    b = beta.astype(jnp.float32)
    scale = (g * inv_std).reshape(1, Cout)
    shift = (b - mean * g * inv_std).reshape(1, Cout)

    # ---- Pass 2: normalize + LeakyReLU (element-wise, real channels only) --
    cost2 = pl.CostEstimate(
        flops=4 * N * rows * Cout, transcendentals=0,
        bytes_accessed=N * rows * Cout * (2 + 4) + 2 * Cout * 4)
    out_nhwc = pl.pallas_call(
        functools.partial(bn_lrelu_kernel, neg_slope=neg_slope),
        grid=(N,),
        in_specs=[
            pl.BlockSpec((1, rows, Cout), lambda n: (n, 0, 0)),
            pl.BlockSpec((1, Cout), lambda n: (0, 0)),
            pl.BlockSpec((1, Cout), lambda n: (0, 0)),
        ],
        out_specs=pl.BlockSpec((1, rows, Cout), lambda n: (n, 0, 0)),
        out_shape=jax.ShapeDtypeStruct((N, rows, Cout), jnp.float32),
        compiler_params=pltpu.CompilerParams(
            dimension_semantics=("parallel",),
            vmem_limit_bytes=64 * 1024 * 1024),
        cost_estimate=cost2,
    )(y, scale, shift)

    # PyTorch NCHW parity: one fused XLA reshape+transpose pass over the
    # unpadded output.  TODO(synk): keep NHWC when chaining blocks.
    return jnp.transpose(out_nhwc.reshape(N, Ho, Wo, Cout), (0, 3, 1, 2))


def _reference(x_nchw, w_oihw, gamma, beta, *, padding=1, eps=1e-5, neg_slope=0.1):
    """Pure-JAX reference (bf16-operand conv + train-mode BN + LeakyReLU)."""
    y = jax.lax.conv_general_dilated(
        x_nchw.astype(jnp.bfloat16), w_oihw.astype(jnp.bfloat16),
        window_strides=(1, 1),
        padding=[(padding, padding), (padding, padding)],
        dimension_numbers=("NCHW", "OIHW", "NCHW"),
        preferred_element_type=jnp.float32)
    mean = jnp.mean(y, axis=(0, 2, 3), keepdims=True)
    var = jnp.mean((y - mean) ** 2, axis=(0, 2, 3), keepdims=True)
    yn = (y - mean) * jax.lax.rsqrt(var + eps)
    yn = yn * gamma.reshape(1, -1, 1, 1) + beta.reshape(1, -1, 1, 1)
    return jnp.where(yn > 0, yn, neg_slope * yn)


if __name__ == "__main__":
    key = jax.random.PRNGKey(0)
    k_x, k_w = jax.random.split(key)

    N, Cin, H, W = 2, 4, 16, 16
    Cout, KH, KW = 16, 3, 3

    x = jax.random.normal(k_x, (N, Cin, H, W), dtype=jnp.float32)
    # Conv2d weight (bias=False), deterministic random init
    w = jax.random.normal(k_w, (Cout, Cin, KH, KW), dtype=jnp.float32) * 0.1
    # BatchNorm2d default init: gamma=1, beta=0
    gamma = jnp.ones((Cout,), dtype=jnp.float32)
    beta = jnp.zeros((Cout,), dtype=jnp.float32)

    out = jax.block_until_ready(cnn_block(x, w, gamma, beta))
    ref = jax.block_until_ready(_reference(x, w, gamma, beta))

    assert out.shape == (N, Cout, H, W), out.shape
    assert jnp.allclose(out, ref, rtol=2e-2, atol=2e-2), "mismatch vs reference"

    print("KERNEL_OK")
</pallas_src>

<mosaic_0001>
module attributes {stable_mosaic.version = 11 : i64} {
  func.func @conv_stats_kernel(%arg0: i32, %arg1: memref<1x16x16x4xbf16, #tpu.memory_space<vmem>>, %arg2: memref<36x128xbf16, #tpu.memory_space<vmem>>, %arg3: memref<1x256x16xbf16, #tpu.memory_space<vmem>>, %arg4: memref<1x2x128xf32, #tpu.memory_space<vmem>>, %arg5: memref<18x48x4xbf16, #tpu.memory_space<vmem>>, %arg6: memref<16x16x36xbf16, #tpu.memory_space<vmem>>) attributes {dimension_semantics = [#tpu.dimension_semantics<parallel>], iteration_bounds = array<i64: 2>, scalar_prefetch = 0 : i64, scratch_operands = 2 : i64, tpu.core_type = #tpu.core_type<tc>, window_params = [{transform_indices = @transform_0, window_bounds = array<i64: 1, 16, 16, 4>}, {pipeline_mode = #tpu.pipeline_mode<synchronous>, transform_indices = @transform_1, window_bounds = array<i64: 36, 128>}, {transform_indices = @transform_2, window_bounds = array<i64: 1, 256, 16>}, {transform_indices = @transform_3, window_bounds = array<i64: 1, 2, 128>}]} {
    %cst = arith.constant 0.000000e+00 : bf16
    %0 = vector.broadcast %cst : bf16 to vector<1x48x4xbf16>
    %c0 = arith.constant 0 : index
    %c0_0 = arith.constant 0 : index
    %c0_1 = arith.constant 0 : index
    %1 = vector.load %arg5[%c0, %c0_0, %c0_1] : memref<18x48x4xbf16, #tpu.memory_space<vmem>>, vector<1x48x4xbf16>
    tpu.vector_store %arg5[%c0, %c0_0, %c0_1], %0 {strides = array<i32>} : memref<18x48x4xbf16, #tpu.memory_space<vmem>>, vector<1x48x4xbf16>,
    %c17 = arith.constant 17 : index
    %c0_2 = arith.constant 0 : index
    %c0_3 = arith.constant 0 : index
    %2 = vector.load %arg5[%c17, %c0_2, %c0_3] : memref<18x48x4xbf16, #tpu.memory_space<vmem>>, vector<1x48x4xbf16>
    tpu.vector_store %arg5[%c17, %c0_2, %c0_3], %0 {strides = array<i32>} : memref<18x48x4xbf16, #tpu.memory_space<vmem>>, vector<1x48x4xbf16>,
    %cst_4 = arith.constant 0.000000e+00 : bf16
    %3 = vector.broadcast %cst_4 : bf16 to vector<18x16x4xbf16>
    %c0_5 = arith.constant 0 : index
    %c0_6 = arith.constant 0 : index
    %c0_7 = arith.constant 0 : index
    %4 = vector.load %arg5[%c0_5, %c0_6, %c0_7] : memref<18x48x4xbf16, #tpu.memory_space<vmem>>, vector<18x16x4xbf16>
    tpu.vector_store %arg5[%c0_5, %c0_6, %c0_7], %3 {strides = array<i32>} : memref<18x48x4xbf16, #tpu.memory_space<vmem>>, vector<18x16x4xbf16>,
    %cst_8 = arith.constant 0.000000e+00 : bf16
    %5 = vector.broadcast %cst_8 : bf16 to vector<18x16x4xbf16>
    %c0_9 = arith.constant 0 : index
    %c32 = arith.constant 32 : index
    %c0_10 = arith.constant 0 : index
    %6 = vector.load %arg5[%c0_9, %c32, %c0_10] : memref<18x48x4xbf16, #tpu.memory_space<vmem>>, vector<18x16x4xbf16>
    tpu.vector_store %arg5[%c0_9, %c32, %c0_10], %5 {strides = array<i32>} : memref<18x48x4xbf16, #tpu.memory_space<vmem>>, vector<18x16x4xbf16>,
    %c0_11 = arith.constant 0 : index
    %c0_12 = arith.constant 0 : index
    %c0_13 = arith.constant 0 : index
    %c0_14 = arith.constant 0 : index
    %7 = vector.load %arg1[%c0_11, %c0_12, %c0_13, %c0_14] : memref<1x16x16x4xbf16, #tpu.memory_space<vmem>>, vector<1x16x16x4xbf16>
    %8 = vector.shape_cast %7 : vector<1x16x16x4xbf16> to vector<16x16x4xbf16>
    %c1 = arith.constant 1 : index
    %c16 = arith.constant 16 : index
    %c0_15 = arith.constant 0 : index
    %9 = vector.load %arg5[%c1, %c16, %c0_15] : memref<18x48x4xbf16, #tpu.memory_space<vmem>>, vector<16x16x4xbf16>
    tpu.vector_store %arg5[%c1, %c16, %c0_15], %8 {strides = array<i32>} : memref<18x48x4xbf16, #tpu.memory_space<vmem>>, vector<16x16x4xbf16>,
    %c0_16 = arith.constant 0 : index
    %c15 = arith.constant 15 : index
    %c0_17 = arith.constant 0 : index
    %10 = vector.load %arg5[%c0_16, %c15, %c0_17] : memref<18x48x4xbf16, #tpu.memory_space<vmem>>, vector<16x16x4xbf16>
    %c0_18 = arith.constant 0 : index
    %c0_19 = arith.constant 0 : index
    %c0_20 = arith.constant 0 : index
    %11 = vector.load %arg6[%c0_18, %c0_19, %c0_20] : memref<16x16x36xbf16, #tpu.memory_space<vmem>>, vector<16x16x4xbf16>
    tpu.vector_store %arg6[%c0_18, %c0_19, %c0_20], %10 {strides = array<i32>} : memref<16x16x36xbf16, #tpu.memory_space<vmem>>, vector<16x16x4xbf16>,
    %c0_21 = arith.constant 0 : index
    %c16_22 = arith.constant 16 : index
    %c0_23 = arith.constant 0 : index
    %12 = vector.load %arg5[%c0_21, %c16_22, %c0_23] : memref<18x48x4xbf16, #tpu.memory_space<vmem>>, vector<16x16x4xbf16>
    %c0_24 = arith.constant 0 : index
    %c0_25 = arith.constant 0 : index
    %c4 = arith.constant 4 : index
    %13 = vector.load %arg6[%c0_24, %c0_25, %c4] : memref<16x16x36xbf16, #tpu.memory_space<vmem>>, vector<16x16x4xbf16>
    tpu.vector_store %arg6[%c0_24, %c0_25, %c4], %12 {strides = array<i32>} : memref<16x16x36xbf16, #tpu.memory_space<vmem>>, vector<16x16x4xbf16>,
    %c0_26 = arith.constant 0 : index
    %c17_27 = arith.constant 17 : index
    %c0_28 = arith.constant 0 : index
    %14 = vector.load %arg5[%c0_26, %c17_27, %c0_28] : memref<18x48x4xbf16, #tpu.memory_space<vmem>>, vector<16x16x4xbf16>
    %c0_29 = arith.constant 0 : index
    %c0_30 = arith.constant 0 : index
    %c8 = arith.constant 8 : index
    %15 = vector.load %arg6[%c0_29, %c0_30, %c8] : memref<16x16x36xbf16, #tpu.memory_space<vmem>>, vector<16x16x4xbf16>
    tpu.vector_store %arg6[%c0_29, %c0_30, %c8], %14 {strides = array<i32>} : memref<16x16x36xbf16, #tpu.memory_space<vmem>>, vector<16x16x4xbf16>,
    %c1_31 = arith.constant 1 : index
    %c15_32 = arith.constant 15 : index
    %c0_33 = arith.constant 0 : index
    %16 = vector.load %arg5[%c1_31, %c15_32, %c0_33] : memref<18x48x4xbf16, #tpu.memory_space<vmem>>, vector<16x16x4xbf16>
    %c0_34 = arith.constant 0 : index
    %c0_35 = arith.constant 0 : index
    %c12 = arith.constant 12 : index
    %17 = vector.load %arg6[%c0_34, %c0_35, %c12] : memref<16x16x36xbf16, #tpu.memory_space<vmem>>, vector<16x16x4xbf16>
    tpu.vector_store %arg6[%c0_34, %c0_35, %c12], %16 {strides = array<i32>} : memref<16x16x36xbf16, #tpu.memory_space<vmem>>, vector<16x16x4xbf16>,
    %c1_36 = arith.constant 1 : index
    %c16_37 = arith.constant 16 : index
    %c0_38 = arith.constant 0 : index
    %18 = vector.load %arg5[%c1_36, %c16_37, %c0_38] : memref<18x48x4xbf16, #tpu.memory_space<vmem>>, vector<16x16x4xbf16>
    %c0_39 = arith.constant 0 : index
    %c0_40 = arith.constant 0 : index
    %c16_41 = arith.constant 16 : index
    %19 = vector.load %arg6[%c0_39, %c0_40, %c16_41] : memref<16x16x36xbf16, #tpu.memory_space<vmem>>, vector<16x16x4xbf16>
    tpu.vector_store %arg6[%c0_39, %c0_40, %c16_41], %18 {strides = array<i32>} : memref<16x16x36xbf16, #tpu.memory_space<vmem>>, vector<16x16x4xbf16>,
    %c1_42 = arith.constant 1 : index
    %c17_43 = arith.constant 17 : index
    %c0_44 = arith.constant 0 : index
    %20 = vector.load %arg5[%c1_42, %c17_43, %c0_44] : memref<18x48x4xbf16, #tpu.memory_space<vmem>>, vector<16x16x4xbf16>
    %c0_45 = arith.constant 0 : index
    %c0_46 = arith.constant 0 : index
    %c20 = arith.constant 20 : index
    %21 = vector.load %arg6[%c0_45, %c0_46, %c20] : memref<16x16x36xbf16, #tpu.memory_space<vmem>>, vector<16x16x4xbf16>
    tpu.vector_store %arg6[%c0_45, %c0_46, %c20], %20 {strides = array<i32>} : memref<16x16x36xbf16, #tpu.memory_space<vmem>>, vector<16x16x4xbf16>,
    %c2 = arith.constant 2 : index
    %c15_47 = arith.constant 15 : index
    %c0_48 = arith.constant 0 : index
    %22 = vector.load %arg5[%c2, %c15_47, %c0_48] : memref<18x48x4xbf16, #tpu.memory_space<vmem>>, vector<16x16x4xbf16>
    %c0_49 = arith.constant 0 : index
    %c0_50 = arith.constant 0 : index
    %c24 = arith.constant 24 : index
    %23 = vector.load %arg6[%c0_49, %c0_50, %c24] : memref<16x16x36xbf16, #tpu.memory_space<vmem>>, vector<16x16x4xbf16>
    tpu.vector_store %arg6[%c0_49, %c0_50, %c24], %22 {strides = array<i32>} : memref<16x16x36xbf16, #tpu.memory_space<vmem>>, vector<16x16x4xbf16>,
    %c2_51 = arith.constant 2 : index
    %c16_52 = arith.constant 16 : index
    %c0_53 = arith.constant 0 : index
    %24 = vector.load %arg5[%c2_51, %c16_52, %c0_53] : memref<18x48x4xbf16, #tpu.memory_space<vmem>>, vector<16x16x4xbf16>
    %c0_54 = arith.constant 0 : index
    %c0_55 = arith.constant 0 : index
    %c28 = arith.constant 28 : index
    %25 = vector.load %arg6[%c0_54, %c0_55, %c28] : memref<16x16x36xbf16, #tpu.memory_space<vmem>>, vector<16x16x4xbf16>
    tpu.vector_store %arg6[%c0_54, %c0_55, %c28], %24 {strides = array<i32>} : memref<16x16x36xbf16, #tpu.memory_space<vmem>>, vector<16x16x4xbf16>,
    %c2_56 = arith.constant 2 : index
    %c17_57 = arith.constant 17 : index
    %c0_58 = arith.constant 0 : index
    %26 = vector.load %arg5[%c2_56, %c17_57, %c0_58] : memref<18x48x4xbf16, #tpu.memory_space<vmem>>, vector<16x16x4xbf16>
    %c0_59 = arith.constant 0 : index
    %c0_60 = arith.constant 0 : index
    %c32_61 = arith.constant 32 : index
    %27 = vector.load %arg6[%c0_59, %c0_60, %c32_61] : memref<16x16x36xbf16, #tpu.memory_space<vmem>>, vector<16x16x4xbf16>
    tpu.vector_store %arg6[%c0_59, %c0_60, %c32_61], %26 {strides = array<i32>} : memref<16x16x36xbf16, #tpu.memory_space<vmem>>, vector<16x16x4xbf16>,
    %cst_62 = arith.constant 0.000000e+00 : f32
    %28 = vector.broadcast %cst_62 : f32 to vector<1x128xf32>
    %cst_63 = arith.constant 0.000000e+00 : f32
    %29 = vector.broadcast %cst_63 : f32 to vector<1x128xf32>
    %c0_64 = arith.constant 0 : index
    %c0_65 = arith.constant 0 : index
    %c0_66 = arith.constant 0 : index
    %30 = vector.load %arg6[%c0_64, %c0_65, %c0_66] : memref<16x16x36xbf16, #tpu.memory_space<vmem>>, vector<4x16x36xbf16>
    %31 = vector.shape_cast %30 : vector<4x16x36xbf16> to vector<64x36xbf16>
    %c0_67 = arith.constant 0 : index
    %c0_68 = arith.constant 0 : index
    %32 = vector.load %arg2[%c0_67, %c0_68] : memref<36x128xbf16, #tpu.memory_space<vmem>>, vector<36x128xbf16>
    %cst_69 = arith.constant dense<0.000000e+00> : vector<64x128xf32>
    %33 = tpu.matmul %31, %32, %cst_69 {dimension_numbers = #tpu.dot_dimension_numbers<[1], [0], [0], [1], [0, 0, 1, 1], [], []>} : vector<64x36xbf16>, vector<36x128xbf16>, vector<64x128xf32> -> vector<64x128xf32>
    %34 = vector.extract_strided_slice %33 {offsets = [0, 0], sizes = [64, 16], strides = [1, 1]} : vector<64x128xf32> to vector<64x16xf32>
    %35 = arith.truncf %34 : vector<64x16xf32> to vector<64x16xbf16>
    %c0_70 = arith.constant 0 : index
    %c0_71 = arith.constant 0 : index
    %c0_72 = arith.constant 0 : index
    %36 = vector.load %arg3[%c0_70, %c0_71, %c0_72] : memref<1x256x16xbf16, #tpu.memory_space<vmem>>, vector<1x64x16xbf16>
    %37 = vector.shape_cast %36 : vector<1x64x16xbf16> to vector<64x16xbf16>
    %38 = vector.shape_cast %35 : vector<64x16xbf16> to vector<1x64x16xbf16>
    tpu.vector_store %arg3[%c0_70, %c0_71, %c0_72], %38 {strides = array<i32>} : memref<1x256x16xbf16, #tpu.memory_space<vmem>>, vector<1x64x16xbf16>,
    %cst_73 = arith.constant dense<0.000000e+00> : vector<128xf32>
    %39 = vector.multi_reduction <add>, %33, %cst_73 [0] : vector<64x128xf32> to vector<128xf32>
    %40 = vector.shape_cast %39 : vector<128xf32> to vector<1x128xf32>
    %41 = arith.addf %28, %40 : vector<1x128xf32>
    %42 = arith.mulf %33, %33 : vector<64x128xf32>
    %cst_74 = arith.constant dense<0.000000e+00> : vector<128xf32>
    %43 = vector.multi_reduction <add>, %42, %cst_74 [0] : vector<64x128xf32> to vector<128xf32>
    %44 = vector.shape_cast %43 : vector<128xf32> to vector<1x128xf32>
    %45 = arith.addf %29, %44 : vector<1x128xf32>
    %c4_75 = arith.constant 4 : index
    %c0_76 = arith.constant 0 : index
    %c0_77 = arith.constant 0 : index
    %46 = vector.load %arg6[%c4_75, %c0_76, %c0_77] : memref<16x16x36xbf16, #tpu.memory_space<vmem>>, vector<4x16x36xbf16>
    %47 = vector.shape_cast %46 : vector<4x16x36xbf16> to vector<64x36xbf16>
    %c0_78 = arith.constant 0 : index
    %c0_79 = arith.constant 0 : index
    %48 = vector.load %arg2[%c0_78, %c0_79] : memref<36x128xbf16, #tpu.memory_space<vmem>>, vector<36x128xbf16>
    %cst_80 = arith.constant dense<0.000000e+00> : vector<64x128xf32>
    %49 = tpu.matmul %47, %48, %cst_80 {dimension_numbers = #tpu.dot_dimension_numbers<[1], [0], [0], [1], [0, 0, 1, 1], [], []>} : vector<64x36xbf16>, vector<36x128xbf16>, vector<64x128xf32> -> vector<64x128xf32>
    %50 = vector.extract_strided_slice %49 {offsets = [0, 0], sizes = [64, 16], strides = [1, 1]} : vector<64x128xf32> to vector<64x16xf32>
    %51 = arith.truncf %50 : vector<64x16xf32> to vector<64x16xbf16>
    %c0_81 = arith.constant 0 : index
    %c64 = arith.constant 64 : index
    %c0_82 = arith.constant 0 : index
    %52 = vector.load %arg3[%c0_81, %c64, %c0_82] : memref<1x256x16xbf16, #tpu.memory_space<vmem>>, vector<1x64x16xbf16>
    %53 = vector.shape_cast %52 : vector<1x64x16xbf16> to vector<64x16xbf16>
    %54 = vector.shape_cast %51 : vector<64x16xbf16> to vector<1x64x16xbf16>
    tpu.vector_store %arg3[%c0_81, %c64, %c0_82], %54 {strides = array<i32>} : memref<1x256x16xbf16, #tpu.memory_space<vmem>>, vector<1x64x16xbf16>,
    %cst_83 = arith.constant dense<0.000000e+00> : vector<128xf32>
    %55 = vector.multi_reduction <add>, %49, %cst_83 [0] : vector<64x128xf32> to vector<128xf32>
    %56 = vector.shape_cast %55 : vector<128xf32> to vector<1x128xf32>
    %57 = arith.addf %41, %56 : vector<1x128xf32>
    %58 = arith.mulf %49, %49 : vector<64x128xf32>
    %cst_84 = arith.constant dense<0.000000e+00> : vector<128xf32>
    %59 = vector.multi_reduction <add>, %58, %cst_84 [0] : vector<64x128xf32> to vector<128xf32>
    %60 = vector.shape_cast %59 : vector<128xf32> to vector<1x128xf32>
    %61 = arith.addf %45, %60 : vector<1x128xf32>
    %c8_85 = arith.constant 8 : index
    %c0_86 = arith.constant 0 : index
    %c0_87 = arith.constant 0 : index
    %62 = vector.load %arg6[%c8_85, %c0_86, %c0_87] : memref<16x16x36xbf16, #tpu.memory_space<vmem>>, vector<4x16x36xbf16>
    %63 = vector.shape_cast %62 : vector<4x16x36xbf16> to vector<64x36xbf16>
    %c0_88 = arith.constant 0 : index
    %c0_89 = arith.constant 0 : index
    %64 = vector.load %arg2[%c0_88, %c0_89] : memref<36x128xbf16, #tpu.memory_space<vmem>>, vector<36x128xbf16>
    %cst_90 = arith.constant dense<0.000000e+00> : vector<64x128xf32>
    %65 = tpu.matmul %63, %64, %cst_90 {dimension_numbers = #tpu.dot_dimension_numbers<[1], [0], [0], [1], [0, 0, 1, 1], [], []>} : vector<64x36xbf16>, vector<36x128xbf16>, vector<64x128xf32> -> vector<64x128xf32>
    %66 = vector.extract_strided_slice %65 {offsets = [0, 0], sizes = [64, 16], strides = [1, 1]} : vector<64x128xf32> to vector<64x16xf32>
    %67 = arith.truncf %66 : vector<64x16xf32> to vector<64x16xbf16>
    %c0_91 = arith.constant 0 : index
    %c128 = arith.constant 128 : index
    %c0_92 = arith.constant 0 : index
    %68 = vector.load %arg3[%c0_91, %c128, %c0_92] : memref<1x256x16xbf16, #tpu.memory_space<vmem>>, vector<1x64x16xbf16>
    %69 = vector.shape_cast %68 : vector<1x64x16xbf16> to vector<64x16xbf16>
    %70 = vector.shape_cast %67 : vector<64x16xbf16> to vector<1x64x16xbf16>
    tpu.vector_store %arg3[%c0_91, %c128, %c0_92], %70 {strides = array<i32>} : memref<1x256x16xbf16, #tpu.memory_space<vmem>>, vector<1x64x16xbf16>,
    %cst_93 = arith.constant dense<0.000000e+00> : vector<128xf32>
    %71 = vector.multi_reduction <add>, %65, %cst_93 [0] : vector<64x128xf32> to vector<128xf32>
    %72 = vector.shape_cast %71 : vector<128xf32> to vector<1x128xf32>
    %73 = arith.addf %57, %72 : vector<1x128xf32>
    %74 = arith.mulf %65, %65 : vector<64x128xf32>
    %cst_94 = arith.constant dense<0.000000e+00> : vector<128xf32>
    %75 = vector.multi_reduction <add>, %74, %cst_94 [0] : vector<64x128xf32> to vector<128xf32>
    %76 = vector.shape_cast %75 : vector<128xf32> to vector<1x128xf32>
    %77 = arith.addf %61, %76 : vector<1x128xf32>
    %c12_95 = arith.constant 12 : index
    %c0_96 = arith.constant 0 : index
    %c0_97 = arith.constant 0 : index
    %78 = vector.load %arg6[%c12_95, %c0_96, %c0_97] : memref<16x16x36xbf16, #tpu.memory_space<vmem>>, vector<4x16x36xbf16>
    %79 = vector.shape_cast %78 : vector<4x16x36xbf16> to vector<64x36xbf16>
    %c0_98 = arith.constant 0 : index
    %c0_99 = arith.constant 0 : index
    %80 = vector.load %arg2[%c0_98, %c0_99] : memref<36x128xbf16, #tpu.memory_space<vmem>>, vector<36x128xbf16>
    %cst_100 = arith.constant dense<0.000000e+00> : vector<64x128xf32>
    %81 = tpu.matmul %79, %80, %cst_100 {dimension_numbers = #tpu.dot_dimension_numbers<[1], [0], [0], [1], [0, 0, 1, 1], [], []>} : vector<64x36xbf16>, vector<36x128xbf16>, vector<64x128xf32> -> vector<64x128xf32>
    %82 = vector.extract_strided_slice %81 {offsets = [0, 0], sizes = [64, 16], strides = [1, 1]} : vector<64x128xf32> to vector<64x16xf32>
    %83 = arith.truncf %82 : vector<64x16xf32> to vector<64x16xbf16>
    %c0_101 = arith.constant 0 : index
    %c192 = arith.constant 192 : index
    %c0_102 = arith.constant 0 : index
    %84 = vector.load %arg3[%c0_101, %c192, %c0_102] : memref<1x256x16xbf16, #tpu.memory_space<vmem>>, vector<1x64x16xbf16>
    %85 = vector.shape_cast %84 : vector<1x64x16xbf16> to vector<64x16xbf16>
    %86 = vector.shape_cast %83 : vector<64x16xbf16> to vector<1x64x16xbf16>
    tpu.vector_store %arg3[%c0_101, %c192, %c0_102], %86 {strides = array<i32>} : memref<1x256x16xbf16, #tpu.memory_space<vmem>>, vector<1x64x16xbf16>,
    %cst_103 = arith.constant dense<0.000000e+00> : vector<128xf32>
    %87 = vector.multi_reduction <add>, %81, %cst_103 [0] : vector<64x128xf32> to vector<128xf32>
    %88 = vector.shape_cast %87 : vector<128xf32> to vector<1x128xf32>
    %89 = arith.addf %73, %88 : vector<1x128xf32>
    %90 = arith.mulf %81, %81 : vector<64x128xf32>
    %cst_104 = arith.constant dense<0.000000e+00> : vector<128xf32>
    %91 = vector.multi_reduction <add>, %90, %cst_104 [0] : vector<64x128xf32> to vector<128xf32>
    %92 = vector.shape_cast %91 : vector<128xf32> to vector<1x128xf32>
    %93 = arith.addf %77, %92 : vector<1x128xf32>
    %c0_105 = arith.constant 0 : index
    %c0_106 = arith.constant 0 : index
    %c0_107 = arith.constant 0 : index
    %94 = vector.load %arg4[%c0_105, %c0_106, %c0_107] : memref<1x2x128xf32, #tpu.memory_space<vmem>>, vector<1x1x128xf32>
    %95 = vector.shape_cast %94 : vector<1x1x128xf32> to vector<1x128xf32>
    %96 = vector.shape_cast %89 : vector<1x128xf32> to vector<1x1x128xf32>
    tpu.vector_store %arg4[%c0_105, %c0_106, %c0_107], %96 {strides = array<i32>} : memref<1x2x128xf32, #tpu.memory_space<vmem>>, vector<1x1x128xf32>,
    %c0_108 = arith.constant 0 : index
    %c1_109 = arith.constant 1 : index
    %c0_110 = arith.constant 0 : index
    %97 = vector.load %arg4[%c0_108, %c1_109, %c0_110] : memref<1x2x128xf32, #tpu.memory_space<vmem>>, vector<1x1x128xf32>
    %98 = vector.shape_cast %97 : vector<1x1x128xf32> to vector<1x128xf32>
    %99 = vector.shape_cast %93 : vector<1x128xf32> to vector<1x1x128xf32>
    tpu.vector_store %arg4[%c0_108, %c1_109, %c0_110], %99 {strides = array<i32>} : memref<1x2x128xf32, #tpu.memory_space<vmem>>, vector<1x1x128xf32>,
    return
  }
  func.func @transform_0(%arg0: i32) -> (i32, i32, i32, i32) {
    %c0_i32 = arith.constant 0 : i32
    %c0_i32_0 = arith.constant 0 : i32
    %c0_i32_1 = arith.constant 0 : i32
    %c0_i32_2 = arith.constant 0 : i32
    return %arg0, %c0_i32, %c0_i32_0, %c0_i32_1 : i32, i32, i32, i32
  }
  func.func @transform_1(%arg0: i32) -> (i32, i32) {
    %c0_i32 = arith.constant 0 : i32
    %c0_i32_0 = arith.constant 0 : i32
    %c0_i32_1 = arith.constant 0 : i32
    return %c0_i32, %c0_i32_0 : i32, i32
  }
  func.func @transform_2(%arg0: i32) -> (i32, i32, i32) {
    %c0_i32 = arith.constant 0 : i32
    %c0_i32_0 = arith.constant 0 : i32
    %c0_i32_1 = arith.constant 0 : i32
    return %arg0, %c0_i32, %c0_i32_0 : i32, i32, i32
  }
  func.func @transform_3(%arg0: i32) -> (i32, i32, i32) {
    %c0_i32 = arith.constant 0 : i32
    %c0_i32_0 = arith.constant 0 : i32
    %c0_i32_1 = arith.constant 0 : i32
    return %arg0, %c0_i32, %c0_i32_0 : i32, i32, i32
  }
}

</mosaic_0001>

<bundles_post_ra>
// kernel: tpu_custom_call.1
= control target key start
LH: loop header
LB: loop body
LE: loop exit
PB: predicated region body
PF: predicated region fallthrough
CT: control target
= control target key end

     0   :  { %9 = vsyncpa [#allocation5], 0  ;;  %s4922_s0 = inlined_call_operand.hbm [shape: bf16[2,16,16,4], index: 0, kind: input, shape index: {}]   ;;  %s4923_s1 = inlined_call_operand.hbm [shape: bf16[36,128], index: 1, kind: input, shape index: {}]   ;;  %s4924_s2 = inlined_call_operand.hbm [shape: bf16[2,256,16], index: 2, kind: output, shape index: {0}]   ;;  %s4925_s3 = inlined_call_operand.hbm [shape: f32[2,2,128], index: 3, kind: output, shape index: {1}]  }
   0x1   :  { %11 = vsyncpa [#allocation5 + $0x1], 0 }
   0x2   :  { %12 = vsyncpa [#allocation8], 0 }
   0x3   :  { %13 = vsyncpa [#allocation6], 0 }
   0x4   :  { %15 = vsyncpa [#allocation6 + $0x1], 0 }
   0x5   :  { %16 = vsyncpa [#allocation11], 0 }
   0x6   :  { %18 = vsyncpa [#allocation11 + $0x1], 0  ;;  %s3795_s12 = smov 0   ;;  %s3797_s13 = smov 0  }
   0x7   :  { %s3799_s14 = smov 0   ;;  %s3801_s15 = smov 0  }
   0x8 LB: > { %s3816_s16 = sadd.s32 4294967295, %s3757_s15   ;;  %s3275_s17 = sadd.s32 4294967294, %s3757_s15   ;;  %s3757_s15 = sphi %s3801_s15, %s4945_s15   ;;  %s3753_s14 = sphi %s3799_s14, %s4944_s14   ;;  %s3749_s13 = sphi %s3797_s13, %s4943_s13   ;;  %s3745_s12 = sphi %s3795_s12, %s4942_s12  }
   0x9   : > { %p44_p0 = scmp.ne.s32.totalorder %s3749_s13, %s3745_s12  ;;  %p4926_p1 = scmp.eq.s32.totalorder %s3816_s16, 0 }
   0xa   : > { %p95_p3 = scmp.eq.s32.totalorder %s3275_s17, 1  ;;  %p3276_p5 = scmp.ge.s32.totalorder %s3757_s15, 1 }
   0xb   : > { %p3825_p4 = por %p4926_p1, %p44_p0  ;;  %p128_p7 = scmp.lt.s32.totalorder %s3757_s15, 3 }
   0xc   : > { %p3830_p6 = por %p95_p3, %p44_p0  ;;  %s3759_s21 = smov [#allocation7]  }
   0xd   : > { %s4929_s18 = scalar_select %p3825_p4, 1, 0 }
   0xe   : > { %s4930_s19 = scalar_select %p3830_p6, 1, 0 }
   0xf   : > { %p3835_p8 = pnand %p3276_p5, %p128_p7  ;;  %s140_s22 = sshll.u32 %s3759_s21, 4  ;;  %s3839_s22 = int_to_ptr.vmem [resolvable:$true] %s140_s22 }
  0x10   : > { %s3851_s24 = sadd.s32 1, %s3757_s15   ;;  %s31_s25 = sadd.s32 1, %s3753_s14 }
  0x11   : > { %s4931_s20 = scalar_select %p3835_p8, 1, 0 }
  0x12   : > { %p3502_p9 = pneg %p3835_p8  ;;  %s28_s26 = ssub.s32 %s3757_s15, %s3851_s24 }
  0x13   : > { %s3597_s29 = scalar_lea.hbm %s4923_s1, 320 }
  0x14   : > { %p3846_p11 = pnand %p3502_p9, %p4926_p1  ;;  %p3598_p12 = scmp.ne.s32.totalorder %s4923_s1, %s3597_s29 }
  0x15   : > { %p3604_p5 = scmp.lt.u32.totalorder %s3597_s29, %s4923_s1 }
  0x16   : > { %p3599_p13 = pneg %p3846_p11 }
  0x18   : > { %p3600_p0 = pnand %p3599_p13, %p3598_p12 }
  0x1a   : > { %p3601_p3 = pneg %p3600_p0 }
  0x1c   : > { %p3606_p7 = pnand %p3604_p5, %p3601_p3 }
  0x1e   : > { %3609 = shalt.err (!%p3606_p7)
}
  0x1f   : > { %s3610_s7 = scalar_lea.vmem %s3839_s22, 320  ;;  %p3618_p2 = scmp.lt.s32.totalorder %s3839_s22, %s3839_s22 }
  0x20   : > { %p3611_p9 = scmp.ne.s32.totalorder %s3839_s22, %s3610_s7  ;;  %p3619_p6 = scmp.lt.s32.totalorder %s3610_s7, %s3610_s7 }
  0x22   : > { %p3613_p10 = pnand %p3611_p9, %p3599_p13  ;;  %p3620_p4 = por %p3619_p6, %p3618_p2 }
  0x24   : > { %p3614_p1 = pneg %p3613_p10 }
  0x26   : > { %p3621_p8 = pnand %p3620_p4, %p3614_p1 }
  0x28   : > { %3624 = shalt.err (!%p3621_p8)
}
  0x29   : > { %s3760_s8 = smov 64   ;;  %s3761_s9 = smov 4  }
  0x2a   : > { %3505 = dma.hbm_to_vmem [thread:$0]  (!%p3846_p11), %s4923_s1, 320, %s3839_s22, [#allocation8], %s3760_s8, %s3760_s8, %s3761_s9  }
  0x2b   : > { %p29_p1 = scmp.eq.s32.totalorder %s28_s26, 0  ;;  %p38_p2 = scmp.ne.s32.totalorder %s3753_s14, %s3749_s13 }
  0x2c   : > { %p39_p4 = scmp.eq.s32.totalorder %s3757_s15, 0  ;;  %p3518_p6 = scmp.lt.s32.totalorder %s3757_s15, 2 }
  0x2d   : > { %s3885_s17 = scalar_select %p29_p1, %s3753_s14, %s31_s25  }
  0x2e   : > { %p40_p8 = por %p39_p4, %p38_p2  ;;  %p4933_p10 = scmp.eq.s32.totalorder %s3816_s16, 1 }
  0x2f   : > { %s154_s23 = sand.u32 1, %s3753_s14   ;;  %s3370_s27 = sshll.u32 %s3757_s15, 11 }
  0x30   : > { %p3889_p12 = por %p4933_p10, %p38_p2  ;;  %s3279_s28 = sshll.u32 %s154_s23, 7 }
  0x31   : > { %s3898_s4 = scalar_lea.hbm %s4922_s0, %s3370_s27  ;;  %s158_s22 = scalar_lea.vmem [#allocation4], %s3279_s28 }
  0x32   : > { %s165_s25 = sshll.u32 %s158_s22, 4  ;;  %p3900_p11 = pnand %p3518_p6, %p40_p8  ;;  %s3904_s25 = int_to_ptr.vmem [resolvable:$true] %s165_s25 }
  0x33   : > { %s3906_s5 = scalar_lea.sflag [#allocation5], %s154_s23  ;;  %s3625_s6 = scalar_lea.hbm %s3898_s4, 2048 }
  0x34   : > { %p3626_p13 = scmp.ne.s32.totalorder %s3898_s4, %s3625_s6  ;;  %p3627_p0 = pneg %p3900_p11 }
  0x35   : > { %s3630_s11 = scalar_lea.hbm %s4922_s0, 4096  ;;  %p3631_p7 = scmp.lt.u32.totalorder %s3898_s4, %s4922_s0 }
  0x36   : > { %p3628_p3 = pnand %p3627_p0, %p3626_p13  ;;  %p3632_p9 = scmp.lt.u32.totalorder %s3630_s11, %s3625_s6 }
  0x37   : > { %p3634_p2 = scmp.lt.u32.totalorder %s3625_s6, %s3898_s4 }
  0x38   : > { %p3629_p5 = pneg %p3628_p3  ;;  %p3633_p1 = por %p3632_p9, %p3631_p7 }
  0x3a   : > { %p3635_p4 = por %p3634_p2, %p3633_p1 }
  0x3c   : > { %p3636_p6 = pnand %p3635_p4, %p3629_p5 }
  0x3e   : > { %3639 = shalt.err (!%p3636_p6)
}
  0x3f   : > { %s3640_s23 = scalar_lea.vmem %s3904_s25, 2048  ;;  %s3762_s29 = smov [#allocation4]  }
  0x40   : > { %p3641_p8 = scmp.ne.s32.totalorder %s3904_s25, %s3640_s23  ;;  %s3645_s30 = sshll.u32 %s3762_s29, 4  ;;  %s3646_s30 = int_to_ptr.vmem [resolvable:$false] %s3645_s30 }
  0x41   : > { %s3647_s22 = scalar_lea.vmem %s3646_s30, 4096  ;;  %p3648_p3 = scmp.lt.s32.totalorder %s3904_s25, %s3646_s30 }
  0x42   : > { %p3643_p10 = pnand %p3641_p8, %p3627_p0  ;;  %p3649_p7 = scmp.lt.s32.totalorder %s3647_s22, %s3640_s23 }
  0x44   : > { %p3644_p13 = pneg %p3643_p10  ;;  %p3650_p9 = por %p3649_p7, %p3648_p3 }
  0x46   : > { %p3651_p1 = pnand %p3650_p9, %p3644_p13 }
  0x48   : > { %3654 = shalt.err (!%p3651_p1)
}
  0x49   : > { %3509 = dma.hbm_to_vmem [thread:$0]  (!%p3900_p11), %s3898_s4, 2048, %s3904_s25, %s3906_s5, %s3760_s8, %s3760_s8, %s3761_s9  }
  0x4a   : > { %p4936_p0 = scmp.ne.s32.totalorder %s4931_s20, 0 }
  0x4b   : > { %s3940_s6 = sand.u32 (!%p4936_p0), 1, %s3749_s13   ;;  %p4937_p5 = scmp.ne.s32.totalorder (!%p4936_p0), %s4929_s18, 0 }
  0x4c   : > { %177 = sbr.rel (%p4936_p0) target bundleno = 757 (0x2f5), region = 28  ;;  %s3283_s7 = sshll.u32 (!%p4936_p0), %s3940_s6, 7 }
  0x4d   : > { %s180_s10 = scalar_lea.sflag (!%p4936_p0), [#allocation5], %s3940_s6  ;;  %s3946_s26 = scalar_lea.vmem (!%p4936_p0), [#allocation4], %s3283_s7 }
  0x53   : > { %3728 = dma.done.wait (%p4937_p5), %s180_s10, 2048  }
  0x54   : > { %3730 = vsyncadd (%p4937_p5), %s180_s10, 4294965248  ;;  %p4938_p11 = scmp.eq.s32.totalorder %s3816_s16, 0 }
  0x56   : > { %3732 = dma.done.wait (%p4938_p11), [#allocation8], 320   ;;  %p4939_p2 = pmov %p4938_p11 }
  0x57   : > { %vm216_vm0 = vcmask 31744   ;;  %v3763_v0 = vmov 0   ;;  %v3566_v1 = vld [vmem:[%s3946_s26] sm:$0xff]   ;;  %s3764_s18 = smov 4   ;;  %v3567_v6 = vld [vmem:[%s3946_s26 + $0x18] sm:$0xff]   ;;  %v3569_v9 = vld [vmem:[%s3946_s26 + $0x8] sm:$0xff]  }
  0x58   : > { %3734 = vsyncadd (%p4939_p2), [#allocation8], 4294966976  ;;  %218 = vst.msk [vmem:[#allocation2 + $0x8] sm:$0xff] %vm216_vm0, %v3763_v0  ;;  %v3568_v7 = vld [vmem:[%s3946_s26 + $0x20] sm:$0xff]   ;;  %v3570_v11 = vld [vmem:[%s3946_s26 + $0x28] sm:$0xff]   ;;  %s3765_s20 = smov 8  }
  0x59   : > { %217 = vst.msk [vmem:[#allocation2] sm:$0xff] %vm216_vm0, %v3763_v0  ;;  %219 = vst.msk [vmem:[#allocation2 + $0x10] sm:$0xff] %vm216_vm0, %v3763_v0  ;;  %vm791_vm1 = vsmask.f32 7424  ;;  %v3571_v13 = vld [vmem:[%s3946_s26 + $0x10] sm:$0xff]   ;;  %v3573_v23 = vld [vmem:[%s3946_s26 + $0x38] sm:$0xff]  }
  0x5a   : > { %221 = vst.msk [vmem:[#allocation2 + $0x198] sm:$0xff] %vm216_vm0, %v3763_v0  ;;  %222 = vst.msk [vmem:[#allocation2 + $0x1a0] sm:$0xff] %vm216_vm0, %v3763_v0  ;;  %v3572_v18 = vld [vmem:[%s3946_s26 + $0x30] sm:$0xff]   ;;  %vm437_vm2 = vsmask.f32 256  ;;  %v3574_v34 = vld [vmem:[%s3946_s26 + $0x40] sm:$0xff]  }
  0x5b   : > { %223 = vst.msk [vmem:[#allocation2 + $0x1a8] sm:$0xff] %vm216_vm0, %v3763_v0  ;;  %225 = vst.msk [vmem:[#allocation2 + $0x18] sm:$0xff] %vm216_vm0, %v3763_v0  ;;  %s3766_s8 = smov 16   ;;  %s3767_s9 = smov 12   ;;  %vm2437_vm3 = vcmask 1041408   ;;  %vm742_vm4 = vcmask 64544  }
  0x5c   : > { %226 = vst.msk [vmem:[#allocation2 + $0x30] sm:$0xff] %vm216_vm0, %v3763_v0  ;;  %227 = vst.msk [vmem:[#allocation2 + $0x48] sm:$0xff] %vm216_vm0, %v3763_v0  ;;  %s3768_s4 = smov 20   ;;  %s3769_s25 = smov 24   ;;  %vm1032_vm5 = vcmask 97344   ;;  %vm1321_vm6 = vcmask 130144  }
  0x5d   : > { %228 = vst.msk [vmem:[#allocation2 + $0x60] sm:$0xff] %vm216_vm0, %v3763_v0  ;;  %229 = vst.msk [vmem:[#allocation2 + $0x78] sm:$0xff] %vm216_vm0, %v3763_v0  ;;  %s3770_s5 = smov 28   ;;  %s3771_s11 = smov 32   ;;  %vm1418_vm7 = vcmask 162944   ;;  %vm1707_vm8 = vcmask 195744  }
  0x5e   : > { %230 = vst.msk [vmem:[#allocation2 + $0x90] sm:$0xff] %vm216_vm0, %v3763_v0  ;;  %231 = vst.msk [vmem:[#allocation2 + $0xa8] sm:$0xff] %vm216_vm0, %v3763_v0  ;;  %vm1997_vm9 = vcmask 228544   ;;  %vm2094_vm10 = vcmask 261344   ;;  %vm2383_vm11 = vcmask 294144   ;;  %vm2424_vm12 = vcmask 293888  }
  0x5f   : > { %232 = vst.msk [vmem:[#allocation2 + $0xc0] sm:$0xff] %vm216_vm0, %v3763_v0  ;;  %233 = vst.msk [vmem:[#allocation2 + $0xd8] sm:$0xff] %vm216_vm0, %v3763_v0  ;;  %v3999_v2 = vld [vmem:[#allocation2 + $0x8] sm:$0xff]  ;;  %vm2538_vm13 = vcmask 125952   ;;  %s4767_s27 = scalar_lea.vmem [#allocation9], %s3283_s7  ;;  %s3403_s28 = sshll.u32 %s3816_s16, 11 }
  0x60   : > { %234 = vst.msk [vmem:[#allocation2 + $0xf0] sm:$0xff] %vm216_vm0, %v3763_v0  ;;  %235 = vst.msk [vmem:[#allocation2 + $0x108] sm:$0xff] %vm216_vm0, %v3763_v0  ;;  %694 = vrot.lane.b32.xlu0 %v3999_v2, %s3764_s18  ;;  %v793_v4 = vshrl.u32 %v3999_v2, 16  ;;  %v795_v5 = vshll.u32 %v3999_v2, 16  ;;  %s3147_s23 = sshll.u32 %s4767_s27, 4  ;;  %s4836_s22 = scalar_lea.hbm %s4924_s2, %s3403_s28  ;;  %s4840_s23 = int_to_ptr.vmem [resolvable:$true] %s3147_s23 }
  0x61   : > { %236 = vst.msk [vmem:[#allocation2 + $0x120] sm:$0xff] %vm216_vm0, %v3763_v0  ;;  %237 = vst.msk [vmem:[#allocation2 + $0x138] sm:$0xff] %vm216_vm0, %v3763_v0  ;;  %s3129_s7 = scalar_lea.sflag [#allocation6], %s3940_s6  ;;  %s3655_s10 = scalar_lea.vmem %s4840_s23, 2048 }
  0x62   : > { %238 = vst.msk [vmem:[#allocation2 + $0x150] sm:$0xff] %vm216_vm0, %v3763_v0  ;;  %239 = vst.msk [vmem:[#allocation2 + $0x168] sm:$0xff] %vm216_vm0, %v3763_v0  ;;  %v797_v10 = vrot.slane %v795_v5, 1  ;;  %v1049_v15 = vld [vmem:[#allocation2 + $0x18] sm:$0x80]  ;;  %p3656_p4 = scmp.ne.s32.totalorder %s4840_s23, %s3655_s10 }
  0x63   : > { %240 = vst.msk [vmem:[#allocation2 + $0x180] sm:$0xff] %vm216_vm0, %v3763_v0  ;;  %243 = vst.msk [vmem:[#allocation2 + $0x28] sm:$0xff] %vm216_vm0, %v3763_v0  ;;  %v1082_v20 = vshrl.u32 %v1049_v15, 16  ;;  %v1051_v26 = vld [vmem:[#allocation2 + $0x30] sm:$0x80] }
  0x64   : > { %244 = vst.msk [vmem:[#allocation2 + $0x40] sm:$0xff] %vm216_vm0, %v3763_v0  ;;  %245 = vst.msk [vmem:[#allocation2 + $0x58] sm:$0xff] %vm216_vm0, %v3763_v0  ;;  %v798_v14 = vor.u32 %v797_v10, %v793_v4  ;;  %v1094_v37 = vshrl.u32 %v1051_v26, 16  ;;  %v1057_v39 = vld [vmem:[#allocation2 + $0x78] sm:$0x80]  ;;  %p3657_p6 = pnand %p3656_p4, %p3889_p12 }
  0x65   : > { %246 = vst.msk [vmem:[#allocation2 + $0x70] sm:$0xff] %vm216_vm0, %v3763_v0  ;;  %247 = vst.msk [vmem:[#allocation2 + $0x88] sm:$0xff] %vm216_vm0, %v3763_v0  ;;  %v1084_v35 = vrot.slane %v1082_v20, 7  ;;  %v1130_v51 = vshrl.u32 %v1057_v39, 16  ;;  %v1059_v58 = vld [vmem:[#allocation2 + $0x90] sm:$0x80] }
  0x66   : > { %248 = vst.msk [vmem:[#allocation2 + $0xa0] sm:$0xff] %vm216_vm0, %v3763_v0  ;;  %249 = vst.msk [vmem:[#allocation2 + $0xb8] sm:$0xff] %vm216_vm0, %v3763_v0  ;;  %v1096_v55 = vrot.slane %v1094_v37, 7  ;;  %v1727_v39 = vld [vmem:[#allocation2 + $0x48] sm:$0x80]  ;;  %p3658_p8 = pneg %p3657_p6 }
  0x67   : > { %250 = vst.msk [vmem:[#allocation2 + $0xd0] sm:$0xff] %vm216_vm0, %v3763_v0  ;;  %251 = vst.msk [vmem:[#allocation2 + $0xe8] sm:$0xff] %vm216_vm0, %v3763_v0  ;;  %v1132_v63 = vrot.slane %v1130_v51, 7 }
  0x68   : > { %252 = vst.msk [vmem:[#allocation2 + $0x100] sm:$0xff] %vm216_vm0, %v3763_v0  ;;  %253 = vst.msk [vmem:[#allocation2 + $0x118] sm:$0xff] %vm216_vm0, %v3763_v0 }
  0x69   : > { %254 = vst.msk [vmem:[#allocation2 + $0x130] sm:$0xff] %vm216_vm0, %v3763_v0  ;;  %255 = vst.msk [vmem:[#allocation2 + $0x148] sm:$0xff] %vm216_vm0, %v3763_v0 }
  0x6a   : > { %256 = vst.msk [vmem:[#allocation2 + $0x160] sm:$0xff] %vm216_vm0, %v3763_v0  ;;  %257 = vst.msk [vmem:[#allocation2 + $0x178] sm:$0xff] %vm216_vm0, %v3763_v0  ;;  %v762_v16 = vld [vmem:[#allocation2 + $0x28] sm:$0x1] }
  0x6b   : > { %258 = vst.msk [vmem:[#allocation2 + $0x190] sm:$0xff] %vm216_vm0, %v3763_v0  ;;  %242 = vst.msk [vmem:[#allocation2 + $0x10] sm:$0xff] %vm216_vm0, %v3763_v0  ;;  %v812_v21 = vshll.u32 %v762_v16, 16  ;;  %v1436_v57 = vld [vmem:[#allocation2 + $0x28] sm:$0x1] }
  0x6c   : > { %224 = vst.msk [vmem:[#allocation2] sm:$0xff] %vm216_vm0, %v3763_v0  ;;  %241 = vst.msk [vmem:[#allocation2 + $0x198] sm:$0xff] %vm216_vm0, %v3763_v0  ;;  %v768_v22 = vld [vmem:[#allocation2 + $0x70] sm:$0x1]  ;;  %v770_v44 = vld [vmem:[#allocation2 + $0x88] sm:$0x1] }
  0x6d   : > { %259 = vst.msk [vmem:[#allocation2 + $0x1a8] sm:$0xff] %vm216_vm0, %v3763_v0  ;;  %389 = vst.msk [vmem:[#allocation2 + $0x20] sm:$0xff] %vm216_vm0, %v3566_v1  ;;  %v848_v33 = vshll.u32 %v768_v22, 16  ;;  %v814_v36 = vrot.slane %v812_v21, 1  ;;  %v860_v52 = vshll.u32 %v770_v44, 16  ;;  %v1475_v1 = vshll.u32 %v1436_v57, 16 }
  0x6e   : > { %392 = vst.msk [vmem:[#allocation2 + $0x68] sm:$0xff] %vm216_vm0, %v3567_v6  ;;  %393 = vst.msk [vmem:[#allocation2 + $0x80] sm:$0xff] %vm216_vm0, %v3568_v7  ;;  %v1142_v7 = vshrl.u32 %v1059_v58, 16  ;;  %v1725_v22 = vld [vmem:[#allocation2 + $0x30] sm:$0x80] }
  0x6f   : > { %390 = vst.msk [vmem:[#allocation2 + $0x38] sm:$0xff] %vm216_vm0, %v3569_v9  ;;  %394 = vst.msk [vmem:[#allocation2 + $0x98] sm:$0xff] %vm216_vm0, %v3570_v11  ;;  %v850_v50 = vrot.slane %v848_v33, 1  ;;  %v862_v0 = vrot.slane %v860_v52, 1  ;;  %v1477_v15 = vrot.slane %v1475_v1, 1 }
  0x70   : > { %391 = vst.msk [vmem:[#allocation2 + $0x50] sm:$0xff] %vm216_vm0, %v3571_v13  ;;  %395 = vst.msk [vmem:[#allocation2 + $0xb0] sm:$0xff] %vm216_vm0, %v3572_v18  ;;  %v3575_v13 = vld [vmem:[%s3946_s26 + $0x58] sm:$0xff]   ;;  %v1144_v16 = vrot.slane %v1142_v7, 7 }
  0x71   : > { %396 = vst.msk [vmem:[#allocation2 + $0xc8] sm:$0xff] %vm216_vm0, %v3573_v23  ;;  %397 = vst.msk [vmem:[#allocation2 + $0xe0] sm:$0xff] %vm216_vm0, %v3574_v34  ;;  %v3577_v23 = vld [vmem:[%s3946_s26 + $0x48] sm:$0xff]   ;;  %v1735_v1 = vld [vmem:[#allocation2 + $0xa8] sm:$0x80] }
  0x72   : > { %v760_v3 = vld [vmem:[#allocation2 + $0x10] sm:$0x1]  ;;  %400 = vst.msk [vmem:[#allocation2 + $0x128] sm:$0xff] %vm216_vm0, %v3575_v13  ;;  %398 = vst.msk [vmem:[#allocation2 + $0xf8] sm:$0xff] %vm216_vm0, %v3577_v23 }
  0x73   : > { %v800_v8 = vshll.u32 %v760_v3, 16  ;;  %v405_v13 = vld [vmem:[#allocation2] sm:$0x80] }
  0x74   : > { %v663_v19 = vld [vmem:[#allocation2 + $0x20] sm:$0xff] }
  0x75   : > { %v802_v12 = vrot.slane %v800_v8, 1  ;;  %696 = vrot.lane.b32.xlu0 %v663_v19, %s3764_s18  ;;  %v1086_v24 = vshrl.u32 %v663_v19, 16  ;;  %v1089_v25 = vshll.u32 %v663_v19, 16  ;;  %v4026_v27 = vld [vmem:[#allocation2 + $0x68] sm:$0xff]  ;;  %v4028_v28 = vld [vmem:[#allocation2 + $0x80] sm:$0xff] }
  0x76   : > { %v4031_v29 = vld [vmem:[#allocation2 + $0x38] sm:$0xff]  ;;  %v843_v32 = vshll.u32 %v4026_v27, 16  ;;  %v841_v41 = vshrl.u32 %v4026_v27, 16  ;;  %v1134_v43 = vshrl.u32 %v4028_v28, 16  ;;  %v1137_v48 = vshll.u32 %v4028_v28, 16 }
  0x77   : > { %v803_v17 = vsel %vm791_vm1, %v798_v14, %v802_v12  ;;  %v1088_v30 = vrot.slane %v1086_v24, 7  ;;  %v809_v31 = vrot.slane %v1089_v25, 1  ;;  %v1098_v38 = vshrl.u32 %v4031_v29, 16  ;;  %v4051_v49 = vld [vmem:[#allocation2 + $0x98] sm:$0xff]  ;;  %v1438_v12 = vld [vmem:[#allocation2 + $0x40] sm:$0x1] }
  0x78   : > { %984 = vrot.lane.b32.xlu1 %v803_v17, %s3765_s20  ;;  %v845_v42 = vrot.slane %v843_v32, 1  ;;  %v1101_v47 = vshll.u32 %v4031_v29, 16  ;;  %v1136_v56 = vrot.slane %v1134_v43, 7  ;;  %v857_v61 = vrot.slane %v1137_v48, 1  ;;  %v3576_v17 = vld [vmem:[%s3946_s26 + $0x60] sm:$0xff]  }
  0x79   : > { %704 = vrot.lane.b32.xlu0 %v4028_v28, %s3764_s18  ;;  %v4040_v40 = vor.u32 %v1089_v25, %v1088_v30  ;;  %v810_v45 = vor.u32 %v1086_v24, %v809_v31  ;;  %v1100_v46 = vrot.slane %v1098_v38, 7  ;;  %v1146_v62 = vshrl.u32 %v4051_v49, 16  ;;  %v4088_v24 = vld [vmem:[#allocation2 + $0x50] sm:$0xff]  ;;  %401 = vst.msk [vmem:[#allocation2 + $0x140] sm:$0xff] %vm216_vm0, %v3576_v17  ;;  %v3578_v25 = vld [vmem:[%s3946_s26 + $0x68] sm:$0xff]   ;;  %v3579_v31 = vld [vmem:[%s3946_s26 + $0x50] sm:$0xff]  }
  0x7a   : > { %v4060_v54 = vor.u32 %v845_v42, %v841_v41  ;;  %v4068_v6 = vor.u32 %v1137_v48, %v1136_v56  ;;  %v4071_v9 = vor.u32 %v1134_v43, %v857_v61  ;;  %v1149_v11 = vshll.u32 %v4051_v49, 16  ;;  %402 = vst.msk [vmem:[#allocation2 + $0x158] sm:$0xff] %vm216_vm0, %v3578_v25  ;;  %399 = vst.msk [vmem:[#allocation2 + $0x110] sm:$0xff] %vm216_vm0, %v3579_v31  ;;  %v1733_v56 = vld [vmem:[#allocation2 + $0x90] sm:$0x80]  ;;  %v3581_v31 = vld [vmem:[#allocation7 + $0x8] sm:$0xff]  }
  0x7b   : > { %v1092_v53 = vsel %vm437_vm2, %v1084_v35, %v4040_v40  ;;  %v815_v59 = vsel %vm791_vm1, %v810_v45, %v814_v36  ;;  %v1103_v60 = vor.u32 %v1101_v47, %v1100_v46  ;;  %v1148_v10 = vrot.slane %v1146_v62, 7  ;;  %v1444_v36 = vld [vmem:[#allocation2 + $0x88] sm:$0x1]  ;;  %v4124_v61 = vld [vmem:[#allocation2 + $0xb0] sm:$0xff]  ;;  %v407_v17 = vld [vmem:[#allocation2 + $0x18] sm:$0x80] }
  0x7c   : > { %702 = vrot.lane.b32.xlu1 %v4026_v27, %s3764_s18  ;;  %v851_v3 = vsel %vm791_vm1, %v4060_v54, %v850_v50  ;;  %v1140_v14 = vsel %vm437_vm2, %v1132_v63, %v4068_v6  ;;  %v863_v18 = vsel %vm791_vm1, %v4071_v9, %v862_v0  ;;  %v1484_v20 = vrot.slane %v1101_v47, 1  ;;  %v1446_v47 = vld [vmem:[#allocation2 + $0xa0] sm:$0x1] }
  0x7d   : > { %1372 = vrot.lane.b32.xlu0 %v4031_v29, %s3766_s8  ;;  %v1104_v8 = vsel %vm437_vm2, %v1096_v55, %v1103_v60  ;;  %v1487_v21 = vshll.u32 %v1438_v12, 16  ;;  %v1478_v26 = vsel %vm791_vm1, %v810_v45, %v1477_v15  ;;  %v1758_v30 = vshrl.u32 %v1725_v22, 16  ;;  %v413_v22 = vld [vmem:[#allocation2 + $0x60] sm:$0x80] }
  0x7e   : > { %v4102_v34 = vor.u32 %v1484_v20, %v1098_v38  ;;  %v1774_v37 = vshrl.u32 %v4088_v24, 16  ;;  %v1523_v43 = vshll.u32 %v1444_v36, 16  ;;  %v1770_v45 = vshrl.u32 %v1727_v39, 16 }
  0x7f   : > { %v1489_v35 = vrot.slane %v1487_v21, 1  ;;  %v1760_v42 = vrot.slane %v1758_v30, 7  ;;  %v1777_v46 = vshll.u32 %v4088_v24, 16  ;;  %v1535_v55 = vshll.u32 %v1446_v47, 16  ;;  %v415_v30 = vld [vmem:[#allocation2 + $0x78] sm:$0x80] }
  0x80   : > { %1370 = vrot.lane.b32.xlu1 %v663_v19, %s3766_s8  ;;  %v4085_v19 = vor.u32 %v1149_v11, %v1148_v10  ;;  %v1776_v38 = vrot.slane %v1774_v37, 7  ;;  %v1525_v50 = vrot.slane %v1523_v43, 1  ;;  %v1772_v51 = vrot.slane %v1770_v45, 7 }
  0x81   : > { %986 = vrot.lane.b32.xlu0 %v815_v59, %s3765_s20  ;;  %v1490_v44 = vsel %vm791_vm1, %v4102_v34, %v1489_v35  ;;  %v1768_v48 = vsel %vm437_vm2, %v1760_v42, %v1103_v60  ;;  %v1806_v58 = vshrl.u32 %v1733_v56, 16  ;;  %v2112_v59 = vld [vmem:[#allocation2 + $0x40] sm:$0x1]  ;;  %v1537_v0 = vrot.slane %v1535_v55, 1 }
  0x82   : > { %v1152_v33 = vsel %vm437_vm2, %v1144_v16, %v4085_v19  ;;  %v4117_v52 = vor.u32 %v1777_v46, %v1776_v38  ;;  %v1526_v57 = vsel %vm791_vm1, %v4071_v9, %v1525_v50  ;;  %v1822_v7 = vshrl.u32 %v4124_v61, 16 }
  0x83   : > { %v1808_v10 = vrot.slane %v1806_v58, 7  ;;  %v1818_v15 = vshrl.u32 %v1735_v1, 16  ;;  %v439_v20 = vshrl.u32 %v405_v13, 16  ;;  %v2160_v35 = vrot.slane %v1777_v46, 1  ;;  %v3584_v58 = vld [vmem:[#allocation7] sm:$0xff]  }
  0x84   : > { %1273 = vrot.lane.b32.xlu1 %v1092_v53, %s3767_s9  ;;  %v1532_v53 = vrot.slane %v1149_v11, 1  ;;  %v1780_v60 = vsel %vm437_vm2, %v1772_v51, %v4117_v52  ;;  %v445_v11 = vrot.slane %v793_v4, 7  ;;  %v1824_v16 = vrot.slane %v1822_v7, 7  ;;  %3446 = vmatprep.subr.bf16.mxu1 %v3584_v58 }
  0x85   : > { %1275 = vrot.lane.b32.xlu0 %v1104_v8, %s3767_s9  ;;  %v1788_v8 = vrot.slane %v841_v41, 7  ;;  %v1825_v4 = vshll.u32 %v4124_v61, 16  ;;  %v1820_v23 = vrot.slane %v1818_v15, 7  ;;  %v441_v25 = vrot.slane %v439_v20, 7  ;;  %3447 = vmatpush3.bf16.msra.mxu1 %v3584_v58  ;;  %v417_v58 = vld [vmem:[#allocation2 + $0x90] sm:$0x80] }
  0x86   : > { %v4130_v63 = vor.u32 %v1532_v53, %v1146_v62  ;;  %v448_v21 = vor.u32 %v795_v5, %v445_v11  ;;  %v764_v5 = vld [vmem:[#allocation2 + $0x40] sm:$0x1]  ;;  %v487_v42 = vshrl.u32 %v413_v22, 16  ;;  %v499_v43 = vshrl.u32 %v415_v30, 16  ;;  %v1061_v30 = vld [vmem:[#allocation2 + $0xa8] sm:$0x80] }
  0x87   : > { %v4143_v12 = vor.u32 %v1788_v8, %v843_v32  ;;  %v1816_v32 = vsel %vm437_vm2, %v1808_v10, %v4085_v19  ;;  %v4160_v19 = vor.u32 %v1825_v4, %v1824_v16  ;;  %v824_v46 = vshll.u32 %v764_v5, 16  ;;  %v2120_v53 = vld [vmem:[#allocation2 + $0xa0] sm:$0x1]  ;;  %v2122_v8 = vld [vmem:[#allocation2 + $0xb8] sm:$0x1] }
  0x88   : > { %992 = vrot.lane.b32.xlu1 %v851_v3, %s3765_s20  ;;  %v2151_v3 = vshll.u32 %v2112_v59, 16  ;;  %v1538_v62 = vsel %vm791_vm1, %v4130_v63, %v1537_v0  ;;  %v449_v36 = vsel %vm437_vm2, %v441_v25, %v448_v21  ;;  %v489_v38 = vrot.slane %v487_v42, 7  ;;  %v1053_v59 = vld [vmem:[#allocation2 + $0x48] sm:$0x80]  ;;  %v772_v11 = vld [vmem:[#allocation2 + $0xa0] sm:$0x1] }
  0x89   : > { %994 = vrot.lane.b32.xlu0 %v863_v18, %s3765_s20  ;;  %v2114_v18 = vld [vmem:[#allocation2 + $0x58] sm:$0x1]  ;;  %646 = vst.msk [vmem:[#allocation3] sm:$0xff] %vm216_vm0, %v449_v36  ;;  %v501_v47 = vrot.slane %v499_v43, 7  ;;  %v4178_v50 = vor.u32 %v2160_v35, %v1774_v37  ;;  %v826_v37 = vrot.slane %v824_v46, 1  ;;  %v2199_v56 = vshll.u32 %v2120_v53, 16 }
  0x8a   : > { %v2153_v41 = vrot.slane %v2151_v3, 1  ;;  %v2163_v2 = vshll.u32 %v2114_v18, 16  ;;  %v497_v51 = vsel %vm437_vm2, %v489_v38, %v4143_v12  ;;  %v1106_v3 = vshrl.u32 %v1053_v59, 16  ;;  %v774_v21 = vld [vmem:[#allocation2 + $0xb8] sm:$0x1] }
  0x8b   : > { %650 = vst.msk [vmem:[#allocation3 + $0x20] sm:$0xff] %vm216_vm0, %v497_v51  ;;  %v509_v55 = vsel %vm437_vm2, %v501_v47, %v4068_v6  ;;  %v827_v0 = vsel %vm791_vm1, %v4102_v34, %v826_v37  ;;  %v2201_v1 = vrot.slane %v2199_v56, 1  ;;  %v2211_v15 = vshll.u32 %v2122_v8, 16  ;;  %v411_v35 = vld [vmem:[#allocation2 + $0x48] sm:$0x80]  ;;  %v418_v59 = vld [vmem:[#allocation2 + $0x98] sm:$0xff] }
  0x8c   : > { %1281 = vrot.lane.b32.xlu1 %v1140_v14, %s3767_s9  ;;  %v3580_v14 = vld [vmem:[#allocation7] sm:$0xff]   ;;  %651 = vst.msk [vmem:[#allocation3 + $0x28] sm:$0xff] %vm216_vm0, %v509_v55  ;;  %v872_v16 = vshll.u32 %v772_v11, 16  ;;  %v1154_v42 = vshrl.u32 %v1061_v30, 16  ;;  %v1440_v43 = vld [vmem:[#allocation2 + $0x58] sm:$0x1] }
  0x8d   : > { %1283 = vrot.lane.b32.xlu0 %v1152_v33, %s3767_s9  ;;  %3432 = vmatprep.subr.bf16.mxu0 %v3580_v14  ;;  %v2154_v33 = vsel %vm791_vm1, %v4102_v34, %v2153_v41  ;;  %v2202_v13 = vsel %vm791_vm1, %v4130_v63, %v2201_v1  ;;  %v1108_v34 = vrot.slane %v1106_v3, 7  ;;  %v1055_v41 = vld [vmem:[#allocation2 + $0x60] sm:$0x80]  ;;  %v475_v47 = vshrl.u32 %v411_v35, 16 }
  0x8e   : > { %3433 = vmatpush3.bf16.msra.mxu0 %v3580_v14  ;;  %v2208_v14 = vrot.slane %v1825_v4, 1  ;;  %v2213_v4 = vrot.slane %v2211_v15, 1  ;;  %v1063_v46 = vld [vmem:[#allocation2 + $0xc0] sm:$0x80]  ;;  %v1156_v3 = vrot.slane %v1154_v42, 7  ;;  %v515_v15 = vshrl.u32 %v418_v59, 16 }
  0x8f   : > { %3434 = vmatprep.subr.bf16.mxu0 %v3581_v31  ;;  %v1116_v22 = vsel %vm437_vm2, %v1108_v34, %v4117_v52  ;;  %v4218_v52 = vld [vmem:[#allocation2 + $0xc8] sm:$0xff]  ;;  %v477_v56 = vrot.slane %v475_v47, 7  ;;  %v1166_v8 = vshrl.u32 %v1063_v46, 16  ;;  %v1448_v42 = vld [vmem:[#allocation2 + $0xb8] sm:$0x1] }
  0x90   : > { %1659 = vrot.lane.b32.xlu1 %v1478_v26, %s3768_s4  ;;  %v451_v26 = vshrl.u32 %v407_v17, 16  ;;  %v409_v17 = vld [vmem:[#allocation2 + $0x30] sm:$0x80]  ;;  %v4210_v20 = vor.u32 %v2208_v14, %v1822_v7  ;;  %v1170_v51 = vshrl.u32 %v4218_v52, 16  ;;  %v511_v14 = vshrl.u32 %v417_v58, 16 }
  0x91   : > { %1661 = vrot.lane.b32.xlu0 %v1490_v44, %s3768_s4  ;;  %v3583_v44 = vld [vmem:[%s3946_s26 + $0x70] sm:$0xff]   ;;  %v463_v25 = vshrl.u32 %v409_v17, 16  ;;  %v420_v17 = vld [vmem:[#allocation2 + $0xb0] sm:$0xff]  ;;  %v1547_v46 = vshll.u32 %v1448_v42, 16 }
  0x92   : > { %v453_v39 = vrot.slane %v451_v26, 7  ;;  %3435 = vmatpush3.bf16.msra.mxu0 %v3581_v31  ;;  %403 = vst.msk [vmem:[#allocation2 + $0x170] sm:$0xff] %vm216_vm0, %v3583_v44  ;;  %v874_v26 = vrot.slane %v872_v16, 1  ;;  %v2214_v7 = vsel %vm791_vm1, %v4210_v20, %v2213_v4  ;;  %v1172_v11 = vrot.slane %v1170_v51, 7  ;;  %v419_v16 = vld [vmem:[#allocation2 + $0xa8] sm:$0x80] }
  0x93   : > { %v1164_v4 = vsel %vm437_vm2, %v1156_v3, %v4160_v19 }
  0x94   : > { %1378 = vrot.lane.b32.xlu1 %v4028_v28, %s3766_s8  ;;  %v461_v45 = vsel %vm437_vm2, %v453_v39, %v4040_v40  ;;  %v2165_v40 = vrot.slane %v2163_v2, 1  ;;  %v465_v2 = vrot.slane %v463_v25, 7  ;;  %v412_v39 = vld [vmem:[#allocation2 + $0x50] sm:$0xff] }
  0x95   : > { %1380 = vrot.lane.b32.xlu0 %v4051_v49, %s3766_s8  ;;  %647 = vst.msk [vmem:[#allocation3 + $0x8] sm:$0xff] %vm216_vm0, %v461_v45  ;;  %v875_v45 = vsel %vm791_vm1, %v4130_v63, %v874_v26  ;;  %v479_v55 = vshrl.u32 %v412_v39, 16  ;;  %v482_v37 = vshll.u32 %v412_v39, 16  ;;  %v3586_v63 = vld [vmem:[#allocation7 + $0x10] ss:$0 sps:$4 sm:$0x33]  }
  0x96   : > { %v1729_v26 = vld [vmem:[#allocation2 + $0x60] sm:$0x80] }
  0x98   : > { %1949 = vrot.lane.b32.xlu1 %v1768_v48, %s3769_s25  ;;  %v1828_v48 = vsel %vm437_vm2, %v1820_v23, %v4160_v19  ;;  %v1118_v23 = vshrl.u32 %v1055_v41, 16  ;;  %v518_v41 = vshll.u32 %v418_v59, 16 }
  0x99   : > { %1951 = vrot.lane.b32.xlu0 %v1780_v60, %s3769_s25 }
  0x9a   : > { %v1120_v36 = vrot.slane %v1118_v23, 7 }
  0x9c   : > { %1667 = vrot.lane.b32.xlu1 %v1526_v57, %s3768_s4  ;;  %v766_v57 = vld [vmem:[#allocation2 + $0x58] sm:$0x1] }
  0x9d   : > { %1669 = vrot.lane.b32.xlu0 %v1538_v62, %s3768_s4  ;;  %v836_v60 = vshll.u32 %v766_v57, 16  ;;  %v3585_v62 = vld [vmem:[#allocation7 + $0x8] sm:$0xff]   ;;  %v481_v57 = vrot.slane %v479_v55, 7 }
  0x9e   : > { %3448 = vmatprep.subr.bf16.mxu1 %v3585_v62 }
  0x9f   : > { %v838_v10 = vrot.slane %v836_v60, 1  ;;  %3449 = vmatpush3.bf16.msra.mxu1 %v3585_v62  ;;  %v1499_v60 = vshll.u32 %v1440_v43, 16  ;;  %v1173_v62 = vshll.u32 %v4218_v52, 16 }
  0xa0   : > { %2046 = vrot.lane.b32.xlu1 %v4031_v29, %s3770_s5  ;;  %3489 = vmatprep.subr.msk.bf16.mxu1 %vm2437_vm3, %v3586_v63 }
  0xa1   : > { %2048 = vrot.lane.b32.xlu0 %v4088_v24, %s3770_s5  ;;  %v839_v18 = vsel %vm791_vm1, %v4178_v50, %v838_v10  ;;  %v484_v10 = vor.u32 %v482_v37, %v481_v57  ;;  %v4249_v25 = vor.u32 %v1173_v62, %v1172_v11  ;;  %v1556_v58 = vrot.slane %v1173_v62, 1 }
  0xa3   : > { %v485_v34 = vsel %vm437_vm2, %v477_v56, %v484_v10  ;;  %v421_v10 = vld [vmem:[#allocation2 + $0xc0] sm:$0x80]  ;;  %v4293_v62 = vor.u32 %v1556_v58, %v1170_v51 }
  0xa4   : > { %1957 = vrot.lane.b32.xlu1 %v1816_v32, %s3769_s25  ;;  %v410_v32 = vld [vmem:[#allocation2 + $0x38] sm:$0xff]  ;;  %649 = vst.msk [vmem:[#allocation3 + $0x18] sm:$0xff] %vm216_vm0, %v485_v34 }
  0xa5   : > { %698 = vrot.lane.b32.xlu0 %v4031_v29, %s3764_s18  ;;  %v2166_v29 = vsel %vm791_vm1, %v4178_v50, %v2165_v40  ;;  %v467_v31 = vshrl.u32 %v410_v32, 16  ;;  %v3587_v40 = vld [vmem:[%s3946_s26 + $0x78] sm:$0xff]   ;;  %s3772_s26 = smov [#allocation9]  }
  0xa6   : > { %404 = vst.msk [vmem:[#allocation2 + $0x188] sm:$0xff] %vm216_vm0, %v3587_v40 }
  0xa7   : > { %v469_v5 = vrot.slane %v467_v31, 7  ;;  %v523_v31 = vshrl.u32 %v419_v16, 16 }
  0xa8   : > { %2335 = vrot.lane.b32.xlu1 %v2154_v33, %s3771_s11  ;;  %v470_v33 = vshll.u32 %v410_v32, 16  ;;  %v513_v32 = vrot.slane %v511_v14, 7  ;;  %v2116_v14 = vld [vmem:[#allocation2 + $0x70] sm:$0x1] }
  0xa9   : > { %2054 = vrot.lane.b32.xlu0 %v4051_v49, %s3770_s5 }
  0xaa   : > { %v472_v44 = vor.u32 %v470_v33, %v469_v5  ;;  %v525_v33 = vrot.slane %v523_v31, 7  ;;  %v2621_v5 = vsel %vm2437_vm3, %v3586_v63, 0  ;;  %v1549_v63 = vrot.slane %v1547_v46, 1 }
  0xab   : > { %3451 = vmatpush3.bf16.msra.mxu1 %v2621_v5 }
  0xac   : > { %1959 = vrot.lane.b32.xlu1 %v1828_v48, %s3769_s25  ;;  %v3582_v48 = vld [vmem:[#allocation7 + $0x10] ss:$0 sps:$4 sm:$0x33]   ;;  %v473_v53 = vsel %vm437_vm2, %v465_v2, %v472_v44  ;;  %v1782_v2 = vshrl.u32 %v1729_v26, 16  ;;  %v1731_v44 = vld [vmem:[#allocation2 + $0x78] sm:$0x80] }
  0xad   : > { %700 = vrot.lane.b32.xlu0 %v4088_v24, %s3764_s18  ;;  %648 = vst.msk [vmem:[#allocation3 + $0x10] sm:$0xff] %vm216_vm0, %v473_v53  ;;  %3488 = vmatprep.subr.msk.bf16.mxu0 %vm2437_vm3, %v3582_v48  ;;  %v1794_v40 = vshrl.u32 %v1731_v44, 16  ;;  %v1450_v53 = vld [vmem:[#allocation2 + $0xd0] sm:$0x1]  ;;  %v423_v26 = vld [vmem:[#allocation2 + $0xd8] sm:$0x80] }
  0xae   : > { %v1559_v59 = vshll.u32 %v1450_v53, 16 }
  0xaf   : > { %v1796_v57 = vrot.slane %v1794_v40, 7  ;;  %v1748_v40 = vld [vmem:[#allocation2 + $0x140] sm:$0xff] }
  0xb0   : > { %2337 = vrot.lane.b32.xlu1 %v2166_v29, %s3771_s11  ;;  %v1128_v29 = vsel %vm437_vm2, %v1120_v36, %v4143_v12 }
  0xb1   : > { %2056 = vrot.lane.b32.xlu0 %v4124_v61, %s3770_s5  ;;  %v1804_v11 = vsel %vm437_vm2, %v1796_v57, %v4068_v6 }
  0xb4   : > { %988 = vrot.lane.b32.xlu1 %v827_v0, %s3765_s20  ;;  %v2439_v0 = vsel %vm2437_vm3, %v3582_v48, 0 }
  0xb5   : > { %706 = vrot.lane.b32.xlu0 %v4051_v49, %s3764_s18  ;;  %v884_v49 = vshll.u32 %v774_v21, 16  ;;  %3437 = vmatpush3.bf16.msra.mxu0 %v2439_v0  ;;  %v1501_v21 = vrot.slane %v1499_v60, 1  ;;  %v1737_v60 = vld [vmem:[#allocation2 + $0xc0] sm:$0x80]  ;;  %v1457_v0 = vld [vmem:[#allocation2 + $0x128] sm:$0xff] }
  0xb6   : > { %v1600_v3 = vshrl.u32 %v1457_v0, 16 }
  0xb7   : > { %v886_v38 = vrot.slane %v884_v49, 1  ;;  %v527_v49 = vshrl.u32 %v420_v17, 16  ;;  %v1502_v19 = vsel %vm791_vm1, %v4178_v50, %v1501_v21  ;;  %v1784_v50 = vrot.slane %v1782_v2, 7  ;;  %v2118_v2 = vld [vmem:[#allocation2 + $0x88] sm:$0x1] }
  0xb8   : > { %2343 = vrot.lane.b32.xlu1 %v2202_v13, %s3771_s11  ;;  %v1442_v13 = vld [vmem:[#allocation2 + $0x70] sm:$0x1]  ;;  %v1884_v34 = vrot.slane %v1600_v3, 7  ;;  %v2187_v46 = vshll.u32 %v2118_v2, 16 }
  0xb9   : > { %1277 = vrot.lane.b32.xlu0 %v1116_v22, %s3767_s9  ;;  %v887_v1 = vsel %vm791_vm1, %v4210_v20, %v886_v38  ;;  %v1168_v22 = vrot.slane %v1166_v8, 7  ;;  %v1511_v23 = vshll.u32 %v1442_v13, 16  ;;  %v529_v35 = vrot.slane %v527_v49, 7 }
  0xba   : > { %v1792_v37 = vsel %vm437_vm2, %v1784_v50, %v4143_v12  ;;  %v4287_v12 = vld [vmem:[#allocation2 + $0xe0] sm:$0xff]  ;;  %v1602_v8 = vshll.u32 %v1457_v0, 16  ;;  %v1561_v13 = vrot.slane %v1559_v59, 1  ;;  %v1894_v59 = vshrl.u32 %v1748_v40, 16 }
  0xbb   : > { %v1176_v36 = vsel %vm437_vm2, %v1168_v22, %v4249_v25  ;;  %v1513_v39 = vrot.slane %v1511_v23, 1  ;;  %v1846_v16 = vshrl.u32 %v4287_v12, 16  ;;  %v1849_v49 = vshll.u32 %v4287_v12, 16 }
  0xbc   : > { %990 = vrot.lane.b32.xlu1 %v839_v18, %s3765_s20  ;;  %v517_v18 = vrot.slane %v515_v15, 7  ;;  %v1604_v15 = vrot.slane %v1602_v8, 1  ;;  %v1562_v51 = vsel %vm791_vm1, %v4293_v62, %v1561_v13 }
  0xbd   : > { %708 = vrot.lane.b32.xlu0 %v4124_v61, %s3764_s18  ;;  %v1514_v48 = vsel %vm791_vm1, %v4060_v54, %v1513_v39  ;;  %v1848_v31 = vrot.slane %v1846_v16, 7 }
  0xbe   : > { %v520_v30 = vor.u32 %v518_v41, %v517_v18  ;;  %v422_v41 = vld [vmem:[#allocation2 + $0xc8] sm:$0xff]  ;;  %v2175_v18 = vshll.u32 %v2116_v14, 16  ;;  %v4298_v6 = vor.u32 %v1604_v15, %v1600_v3 }
  0xbf   : > { %v539_v21 = vshrl.u32 %v422_v41, 16  ;;  %v542_v22 = vshll.u32 %v422_v41, 16  ;;  %v778_v15 = vld [vmem:[#allocation2 + $0xe8] sm:$0x1]  ;;  %v1065_v41 = vld [vmem:[#allocation2 + $0xd8] sm:$0x80] }
  0xc0   : > { %2345 = vrot.lane.b32.xlu1 %v2214_v7, %s3771_s11  ;;  %v530_v7 = vshll.u32 %v420_v17, 16  ;;  %v535_v17 = vshrl.u32 %v421_v10, 16 }
  0xc1   : > { %1279 = vrot.lane.b32.xlu0 %v1128_v29, %s3767_s9 }
  0xc2   : > { %v532_v43 = vor.u32 %v530_v7, %v529_v35  ;;  %v2177_v7 = vrot.slane %v2175_v18, 1 }
  0xc4   : > { %996 = vrot.lane.b32.xlu1 %v875_v45, %s3765_s20  ;;  %v4262_v45 = vld [vmem:[#allocation2 + $0x128] sm:$0xff]  ;;  %v533_v38 = vsel %vm437_vm2, %v525_v33, %v532_v43  ;;  %v541_v33 = vrot.slane %v539_v21, 7  ;;  %v4316_v43 = vor.u32 %v1849_v49, %v1848_v31  ;;  %v2178_v50 = vsel %vm791_vm1, %v4060_v54, %v2177_v7 }
  0xc5   : > { %998 = vrot.lane.b32.xlu0 %v887_v1, %s3765_s20  ;;  %v937_v47 = vshrl.u32 %v4262_v45, 16  ;;  %653 = vst.msk [vmem:[#allocation3 + $0x38] sm:$0xff] %vm216_vm0, %v533_v38  ;;  %v939_v55 = vshll.u32 %v4262_v45, 16  ;;  %v1830_v1 = vshrl.u32 %v1737_v60, 16  ;;  %v2189_v54 = vrot.slane %v2187_v46, 1 }
  0xc6   : > { %v544_v5 = vor.u32 %v542_v22, %v541_v33  ;;  %v1178_v22 = vshrl.u32 %v1065_v41, 16  ;;  %v4354_v33 = vld [vmem:[#allocation2 + $0xf8] sm:$0xff]  ;;  %v1452_v41 = vld [vmem:[#allocation2 + $0xe8] sm:$0x1] }
  0xc7   : > { %v1220_v29 = vrot.slane %v937_v47, 7 }
  0xc8   : > { %1374 = vrot.lane.b32.xlu1 %v4088_v24, %s3766_s8  ;;  %v521_v24 = vsel %vm437_vm2, %v513_v32, %v520_v30  ;;  %v1832_v32 = vrot.slane %v1830_v1, 7  ;;  %v424_v30 = vld [vmem:[#allocation2 + $0xe0] sm:$0xff] }
  0xc9   : > { %1376 = vrot.lane.b32.xlu0 %v4026_v27, %s3766_s8  ;;  %652 = vst.msk [vmem:[#allocation3 + $0x30] sm:$0xff] %vm216_vm0, %v521_v24  ;;  %v4280_v56 = vor.u32 %v1220_v29, %v939_v55  ;;  %v537_v24 = vrot.slane %v535_v17, 7  ;;  %v554_v39 = vshll.u32 %v424_v30, 16  ;;  %v1897_v29 = vshll.u32 %v1748_v40, 16 }
  0xca   : > { %v1840_v35 = vsel %vm437_vm2, %v1832_v32, %v4249_v25  ;;  %v431_v32 = vld [vmem:[#allocation2 + $0x138] sm:$0x80] }
  0xcb   : > { %v545_v44 = vsel %vm437_vm2, %v537_v24, %v544_v5  ;;  %v2280_v60 = vrot.slane %v1897_v29, 1  ;;  %v595_v18 = vshrl.u32 %v431_v32, 16  ;;  %v1180_v5 = vrot.slane %v1178_v22, 7  ;;  %v1075_v32 = vld [vmem:[#allocation2 + $0x150] sm:$0x80] }
  0xcc   : > { %1285 = vrot.lane.b32.xlu1 %v1164_v4, %s3767_s9  ;;  %v4300_v4 = vor.u32 %v1884_v34, %v1602_v8  ;;  %654 = vst.msk [vmem:[#allocation3 + $0x40] sm:$0xff] %vm216_vm0, %v545_v44  ;;  %v1067_v44 = vld [vmem:[#allocation2 + $0xf0] sm:$0x80]  ;;  %v1238_v22 = vshrl.u32 %v1075_v32, 16 }
  0xcd   : > { %1287 = vrot.lane.b32.xlu0 %v1176_v36, %s3767_s9  ;;  %v551_v36 = vshrl.u32 %v424_v30, 16  ;;  %v4332_v8 = vor.u32 %v2280_v60, %v1894_v59  ;;  %v597_v31 = vrot.slane %v595_v18, 7  ;;  %v1190_v40 = vshrl.u32 %v1067_v44, 16 }
  0xce   : > { %v1571_v18 = vshll.u32 %v1452_v41, 16  ;;  %v425_v41 = vld [vmem:[#allocation2 + $0xf0] sm:$0x80] }
  0xcf   : > { %v553_v38 = vrot.slane %v551_v36, 7 }
  0xd0   : > { %1663 = vrot.lane.b32.xlu1 %v1502_v19, %s3768_s4  ;;  %v547_v19 = vshrl.u32 %v423_v26, 16 }
  0xd1   : > { %1665 = vrot.lane.b32.xlu0 %v1514_v48, %s3768_s4  ;;  %v776_v48 = vld [vmem:[#allocation2 + $0xd0] sm:$0x1]  ;;  %v556_v53 = vor.u32 %v554_v39, %v553_v38  ;;  %v1188_v38 = vsel %vm437_vm2, %v1180_v5, %v4316_v43 }
  0xd2   : > { %v549_v25 = vrot.slane %v547_v19, 7  ;;  %v896_v58 = vshll.u32 %v776_v48, 16  ;;  %v784_v39 = vld [vmem:[#allocation2 + $0x130] sm:$0x1] }
  0xd3   : > { %v944_v46 = vshll.u32 %v784_v39, 16 }
  0xd4   : > { %1382 = vrot.lane.b32.xlu1 %v4124_v61, %s3766_s8  ;;  %v1550_v61 = vsel %vm791_vm1, %v4210_v20, %v1549_v63  ;;  %v1739_v20 = vld [vmem:[#allocation2 + $0xd8] sm:$0x80]  ;;  %v557_v57 = vsel %vm437_vm2, %v549_v25, %v556_v53  ;;  %v898_v13 = vrot.slane %v896_v58, 1 }
  0xd5   : > { %1384 = vrot.lane.b32.xlu0 %v4218_v52, %s3766_s8  ;;  %v1842_v23 = vshrl.u32 %v1739_v20, 16  ;;  %655 = vst.msk [vmem:[#allocation3 + $0x48] sm:$0xff] %vm216_vm0, %v557_v57  ;;  %v1896_v20 = vrot.slane %v1894_v59, 7  ;;  %v786_v57 = vld [vmem:[#allocation2 + $0x148] sm:$0x1]  ;;  %v1192_v59 = vrot.slane %v1190_v40, 7 }
  0xd6   : > { %v1460_v40 = vld [vmem:[#allocation2 + $0x148] sm:$0x1] }
  0xd7   : > { %v1844_v42 = vrot.slane %v1842_v23, 7  ;;  %v2126_v23 = vld [vmem:[#allocation2 + $0xe8] sm:$0x1]  ;;  %v4352_v30 = vor.u32 %v1897_v29, %v1896_v20  ;;  %v1197_v29 = vshll.u32 %v4354_v33, 16 }
  0xd8   : > { %1953 = vrot.lane.b32.xlu1 %v1792_v37, %s3769_s25  ;;  %v429_v37 = vld [vmem:[#allocation2 + $0x120] sm:$0x80] }
  0xd9   : > { %1955 = vrot.lane.b32.xlu0 %v1804_v11, %s3769_s25  ;;  %v1852_v63 = vsel %vm437_vm2, %v1844_v42, %v4316_v43  ;;  %v2190_v11 = vsel %vm791_vm1, %v4071_v9, %v2189_v54  ;;  %v908_v9 = vshll.u32 %v778_v15, 16  ;;  %v605_v7 = vsel %vm437_vm2, %v597_v31, %v4352_v30  ;;  %v4370_v42 = vld [vmem:[#allocation2 + $0x140] sm:$0xff] }
  0xda   : > { %659 = vst.msk [vmem:[#allocation3 + $0x68] sm:$0xff] %vm216_vm0, %v605_v7  ;;  %v949_v54 = vshrl.u32 %v4370_v42, 16  ;;  %v1573_v7 = vrot.slane %v1571_v18, 1 }
  0xdb   : > { %v910_v2 = vrot.slane %v908_v9, 1 }
  0xdc   : > { %1671 = vrot.lane.b32.xlu1 %v1550_v61, %s3768_s4  ;;  %v2124_v61 = vld [vmem:[#allocation2 + $0xd0] sm:$0x1] }
  0xdd   : > { %1673 = vrot.lane.b32.xlu0 %v1562_v51, %s3768_s4  ;;  %v2223_v14 = vshll.u32 %v2124_v61, 16  ;;  %v899_v51 = vsel %vm791_vm1, %v4293_v62, %v898_v13  ;;  %v956_v61 = vshll.u32 %v786_v57, 16 }
  0xdf   : > { %v2225_v21 = vrot.slane %v2223_v14, 1 }
  0xe0   : > { %2050 = vrot.lane.b32.xlu1 %v4026_v27, %s3770_s5  ;;  %v695_v27 = vpop.permute.xlu0 %694 }
  0xe1   : > { %743 = vst.msk [vmem:[#allocation3] sm:$0xff] %vm742_vm4, %v695_v27  ;;  %2052 = vrot.lane.b32.xlu0 %v4028_v28, %s3770_s5  ;;  %v583_v28 = vshrl.u32 %v429_v37, 16  ;;  %v2226_v19 = vsel %vm791_vm1, %v4293_v62, %v2225_v21  ;;  %v951_v37 = vshll.u32 %v4370_v42, 16 }
  0xe3   : > { %v585_v1 = vrot.slane %v583_v28, 7  ;;  %v946_v28 = vrot.slane %v944_v46, 1 }
  0xe4   : > { %1961 = vrot.lane.b32.xlu1 %v1840_v35, %s3769_s25  ;;  %v2235_v35 = vshll.u32 %v2126_v23, 16 }
  0xe5   : > { %710 = vrot.lane.b32.xlu0 %v4218_v52, %s3764_s18  ;;  %v593_v10 = vsel %vm437_vm2, %v585_v1, %v4300_v4  ;;  %v1073_v1 = vld [vmem:[#allocation2 + $0x138] sm:$0x80] }
  0xe6   : > { %658 = vst.msk [vmem:[#allocation3 + $0x60] sm:$0xff] %vm216_vm0, %v593_v10  ;;  %v2237_v62 = vrot.slane %v2235_v35, 1  ;;  %v4400_v10 = vld [vmem:[#allocation2 + $0x158] sm:$0xff] }
  0xe7   : > { %v697_v3 = vpop.permute.xlu0 %696  ;;  %v1242_v20 = vshrl.u32 %v4400_v10, 16 }
  0xe8   : > { %2339 = vrot.lane.b32.xlu1 %v2178_v50, %s3771_s11  ;;  %744 = vst.msk [vmem:[#allocation3 + $0x8] sm:$0xff] %vm742_vm4, %v697_v3  ;;  %v941_v50 = vrot.slane %v939_v55, 1 }
  0xe9   : > { %2058 = vrot.lane.b32.xlu0 %v4218_v52, %s3770_s5  ;;  %v905_v52 = vrot.slane %v1849_v49, 1  ;;  %v1244_v23 = vrot.slane %v1242_v20, 7 }
  0xea   : > { %v985_v0 = vpop.permute.xlu1 %984  ;;  %v942_v43 = vor.u32 %v941_v50, %v937_v47  ;;  %v1226_v47 = vshrl.u32 %v1073_v1, 16 }
  0xeb   : > { %1033 = vst.msk [vmem:[#allocation3] sm:$0xff] %vm1032_vm5, %v985_v0  ;;  %v705_v17 = vpop.permute.xlu0 %704  ;;  %v4359_v49 = vor.u32 %v1846_v16, %v905_v52  ;;  %v1194_v16 = vshrl.u32 %v4354_v33, 16  ;;  %v953_v0 = vrot.slane %v951_v37, 1 }
  0xec   : > { %1963 = vrot.lane.b32.xlu1 %v1852_v63, %s3769_s25  ;;  %748 = vst.msk [vmem:[#allocation3 + $0x28] sm:$0xff] %vm742_vm4, %v705_v17  ;;  %v1228_v52 = vrot.slane %v1226_v47, 7 }
  0xed   : > { %712 = vrot.lane.b32.xlu0 %v4287_v12, %s3764_s18  ;;  %v911_v25 = vsel %vm791_vm1, %v4359_v49, %v910_v2  ;;  %v1196_v53 = vrot.slane %v1194_v16, 7  ;;  %v2238_v55 = vsel %vm791_vm1, %v4359_v49, %v2237_v62  ;;  %v4409_v15 = vor.u32 %v953_v0, %v949_v54  ;;  %v4430_v62 = vld [vmem:[#allocation2 + $0x110] sm:$0xff] }
  0xee   : > { %v703_v34 = vpop.permute.xlu1 %702  ;;  %v1240_v2 = vrot.slane %v1238_v22, 7  ;;  %v2128_v22 = vld [vmem:[#allocation2 + $0x100] sm:$0x1] }
  0xef   : > { %747 = vst.msk [vmem:[#allocation3 + $0x20] sm:$0xff] %vm742_vm4, %v703_v34  ;;  %v1373_v24 = vpop.permute.xlu0 %1372  ;;  %v4397_v60 = vor.u32 %v1197_v29, %v1196_v53  ;;  %v958_v34 = vrot.slane %v956_v61, 1  ;;  %v1870_v53 = vshrl.u32 %v4430_v62, 16 }
  0xf0   : > { %2341 = vrot.lane.b32.xlu1 %v2190_v11, %s3771_s11  ;;  %v1232_v11 = vrot.slane %v949_v54, 7 }
  0xf1   : > { %2060 = vrot.lane.b32.xlu0 %v4287_v12, %s3770_s5  ;;  %v1200_v14 = vsel %vm437_vm2, %v1192_v59, %v4397_v60  ;;  %v959_v21 = vsel %vm791_vm1, %v4409_v15, %v958_v34  ;;  %v1749_v59 = vld [vmem:[#allocation2 + $0x150] sm:$0x80] }
  0xf2   : > { %v1371_v26 = vpop.permute.xlu1 %1370  ;;  %v1235_v9 = vor.u32 %v1232_v11, %v951_v37  ;;  %v1743_v37 = vld [vmem:[#allocation2 + $0x108] sm:$0x80]  ;;  %v1902_v34 = vshrl.u32 %v1749_v59, 16  ;;  %v780_v59 = vld [vmem:[#allocation2 + $0x100] sm:$0x1] }
  0xf3   : > { %v987_v27 = vpop.permute.xlu0 %986 }
  0xf4   : > { %1000 = vrot.lane.b32.xlu1 %v899_v51, %s3765_s20  ;;  %1034 = vst.msk [vmem:[#allocation3 + $0x8] sm:$0xff] %vm1032_vm5, %v987_v27  ;;  %v1236_v35 = vsel %vm437_vm2, %v1228_v52, %v1235_v9  ;;  %v1741_v27 = vld [vmem:[#allocation2 + $0xf0] sm:$0x80] }
  0xf5   : > { %718 = vrot.lane.b32.xlu0 %v4262_v45, %s3764_s18  ;;  %v947_v45 = vsel %vm791_vm1, %v942_v43, %v946_v28  ;;  %v1872_v43 = vrot.slane %v1870_v53, 7  ;;  %v1873_v28 = vshll.u32 %v4430_v62, 16 }
  0xf6   : > { %v1274_v36 = vpop.permute.xlu1 %1273 }
  0xf7   : > { %1322 = vst.msk [vmem:[#allocation3] sm:$0xff] %vm1321_vm6, %v1274_v36  ;;  %v1276_v63 = vpop.permute.xlu0 %1275  ;;  %v1580_v36 = vrot.slane %v1197_v29, 1  ;;  %v4463_v11 = vor.u32 %v1873_v28, %v1872_v43 }
  0xf8   : > { %2347 = vrot.lane.b32.xlu1 %v2226_v19, %s3771_s11  ;;  %1419 = vst.msk [vmem:[#allocation3] sm:$0xff] %vm1418_vm7, %v1371_v26  ;;  %v1245_v26 = vshll.u32 %v4400_v10, 16 }
  0xf9   : > { %1323 = vst.msk [vmem:[#allocation3 + $0x8] sm:$0xff] %vm1321_vm6, %v1276_v63  ;;  %1289 = vrot.lane.b32.xlu0 %v1188_v38, %s3767_s9  ;;  %v4442_v46 = vor.u32 %v1580_v36, %v1194_v16  ;;  %v1619_v63 = vshll.u32 %v1460_v40, 16  ;;  %v428_v36 = vld [vmem:[#allocation2 + $0x110] sm:$0xff] }
  0xfa   : > { %v993_v48 = vpop.permute.xlu1 %992  ;;  %1420 = vst.msk [vmem:[#allocation3 + $0x8] sm:$0xff] %vm1418_vm7, %v1373_v24  ;;  %v1454_v24 = vld [vmem:[#allocation2 + $0x100] sm:$0x1]  ;;  %v4427_v5 = vor.u32 %v1245_v26, %v1244_v23  ;;  %v1628_v1 = vrot.slane %v1245_v26, 1  ;;  %v4478_v23 = vld [vmem:[#allocation2 + $0x170] sm:$0xff] }
  0xfb   : > { %1037 = vst.msk [vmem:[#allocation3 + $0x20] sm:$0xff] %vm1032_vm5, %v993_v48  ;;  %v995_v3 = vpop.permute.xlu0 %994  ;;  %v1583_v39 = vshll.u32 %v1454_v24, 16  ;;  %v1621_v61 = vrot.slane %v1619_v63, 1 }
  0xfc   : > { %1002 = vrot.lane.b32.xlu1 %v911_v25, %s3765_s20  ;;  %1038 = vst.msk [vmem:[#allocation3 + $0x28] sm:$0xff] %vm1032_vm5, %v995_v3  ;;  %v1854_v25 = vshrl.u32 %v1741_v27, 16  ;;  %v1248_v50 = vsel %vm437_vm2, %v1240_v2, %v4427_v5  ;;  %v426_v3 = vld [vmem:[#allocation2 + $0xf8] sm:$0xff]  ;;  %v4474_v9 = vor.u32 %v1628_v1, %v1242_v20  ;;  %v4487_v2 = vld [vmem:[#allocation7] sm:$0xff]  }
  0xfd   : > { %720 = vrot.lane.b32.xlu0 %v4370_v42, %s3764_s18  ;;  %v1585_v48 = vrot.slane %v1583_v39, 1  ;;  %v566_v32 = vshll.u32 %v426_v3, 16  ;;  %v1622_v52 = vsel %vm791_vm1, %v4409_v15, %v1621_v61  ;;  %v1751_v15 = vld [vmem:[#allocation2 + $0x168] sm:$0x80]  ;;  %3460 = vmatprep.subr.bf16.mxu0 %v4487_v2 }
  0xfe   : > { %v1282_v58 = vpop.permute.xlu1 %1281 }
  0xff   : > { %1326 = vst.msk [vmem:[#allocation3 + $0x20] sm:$0xff] %vm1321_vm6, %v1282_v58  ;;  %v1284_v17 = vpop.permute.xlu0 %1283  ;;  %v1586_v16 = vsel %vm791_vm1, %v4442_v46, %v1585_v48  ;;  %v1462_v58 = vld [vmem:[#allocation2 + $0x160] sm:$0x1] }
 0x100   : > { %2349 = vrot.lane.b32.xlu1 %v2238_v55, %s3771_s11  ;;  %1327 = vst.msk [vmem:[#allocation3 + $0x28] sm:$0xff] %vm1321_vm6, %v1284_v17  ;;  %v1866_v55 = vshrl.u32 %v1743_v37, 16 }
 0x101   : > { %1291 = vrot.lane.b32.xlu0 %v1200_v14, %s3767_s9  ;;  %v563_v14 = vshrl.u32 %v426_v3, 16  ;;  %v2256_v3 = vrot.slane %v1873_v28, 1 }
 0x102   : > { %v1660_v13 = vpop.permute.xlu1 %1659  ;;  %v1868_v47 = vrot.slane %v1866_v55, 7 }
 0x103   : > { %1708 = vst.msk [vmem:[#allocation3] sm:$0xff] %vm1707_vm8, %v1660_v13  ;;  %v1662_v31 = vpop.permute.xlu0 %1661  ;;  %v1631_v13 = vshll.u32 %v1462_v58, 16  ;;  %v565_v17 = vrot.slane %v563_v14, 7 }
 0x104   : > { %1008 = vrot.lane.b32.xlu1 %v947_v45, %s3765_s20  ;;  %1709 = vst.msk [vmem:[#allocation3 + $0x8] sm:$0xff] %vm1707_vm8, %v1662_v31 }
 0x105   : > { %1010 = vrot.lane.b32.xlu0 %v959_v21, %s3765_s20  ;;  %v1633_v21 = vrot.slane %v1631_v13, 1  ;;  %v568_v31 = vor.u32 %v566_v32, %v565_v17 }
 0x106   : > { %v1379_v51 = vpop.permute.xlu1 %1378 }
 0x107   : > { %1423 = vst.msk [vmem:[#allocation3 + $0x20] sm:$0xff] %vm1418_vm7, %v1379_v51  ;;  %v1381_v44 = vpop.permute.xlu0 %1380  ;;  %v1876_v51 = vsel %vm437_vm2, %v1868_v47, %v4463_v11  ;;  %v1634_v27 = vsel %vm791_vm1, %v4474_v9, %v1633_v21  ;;  %v434_v47 = vld [vmem:[#allocation2 + $0x158] sm:$0xff] }
 0x108   : > { %1386 = vrot.lane.b32.xlu1 %v4287_v12, %s3766_s8  ;;  %1424 = vst.msk [vmem:[#allocation3 + $0x28] sm:$0xff] %vm1418_vm7, %v1381_v44  ;;  %v1574_v12 = vsel %vm791_vm1, %v4359_v49, %v1573_v7  ;;  %v1856_v49 = vrot.slane %v1854_v25, 7  ;;  %v2247_v7 = vshll.u32 %v2128_v22, 16  ;;  %v575_v44 = vshrl.u32 %v428_v36, 16 }
 0x109   : > { %1388 = vrot.lane.b32.xlu0 %v4354_v33, %s3766_s8  ;;  %v611_v14 = vshrl.u32 %v434_v47, 16  ;;  %v614_v32 = vshll.u32 %v434_v47, 16 }
 0x10a   : > { %v1950_v19 = vpop.permute.xlu1 %1949  ;;  %v1864_v0 = vsel %vm437_vm2, %v1856_v49, %v4397_v60  ;;  %v559_v60 = vshrl.u32 %v425_v41, 16  ;;  %v577_v40 = vrot.slane %v575_v44, 7  ;;  %v2249_v37 = vrot.slane %v2247_v7, 1  ;;  %v433_v41 = vld [vmem:[#allocation2 + $0x150] sm:$0x80] }
 0x10b   : > { %1998 = vst.msk [vmem:[#allocation3] sm:$0xff] %vm1997_vm9, %v1950_v19  ;;  %v1952_v29 = vpop.permute.xlu0 %1951  ;;  %v1918_v19 = vshrl.u32 %v4478_v23, 16  ;;  %v613_v17 = vrot.slane %v611_v14, 7  ;;  %v3590_v7 = vld [vmem:[#allocation7 + $0x10] ss:$0 sps:$4 sm:$0x33]  }
 0x10c   : > { %1297 = vrot.lane.b32.xlu1 %v1236_v35, %s3767_s9  ;;  %1999 = vst.msk [vmem:[#allocation3 + $0x8] sm:$0xff] %vm1997_vm9, %v1952_v29  ;;  %v561_v26 = vrot.slane %v559_v60, 7  ;;  %v1904_v35 = vrot.slane %v1902_v34, 7  ;;  %v578_v29 = vshll.u32 %v428_v36, 16  ;;  %v2250_v61 = vsel %vm791_vm1, %v4442_v46, %v2249_v37  ;;  %v4540_v36 = vld [vmem:[#allocation7] sm:$0xff]  }
 0x10d   : > { %1299 = vrot.lane.b32.xlu0 %v1248_v50, %s3767_s9  ;;  %v1914_v50 = vshrl.u32 %v1751_v15, 16  ;;  %v1920_v49 = vrot.slane %v1918_v19, 7  ;;  %v920_v34 = vshll.u32 %v780_v59, 16  ;;  %v607_v60 = vshrl.u32 %v433_v41, 16  ;;  %v782_v44 = vld [vmem:[#allocation2 + $0x118] sm:$0x1]  ;;  %3474 = vmatprep.subr.bf16.mxu1 %v4540_v36 }
 0x10e   : > { %v1668_v38 = vpop.permute.xlu1 %1667  ;;  %v569_v20 = vsel %vm437_vm2, %v561_v26, %v568_v31  ;;  %v1912_v25 = vsel %vm437_vm2, %v1904_v35, %v4427_v5  ;;  %v1921_v5 = vshll.u32 %v4478_v23, 16  ;;  %v580_v43 = vor.u32 %v578_v29, %v577_v40  ;;  %v2136_v26 = vld [vmem:[#allocation2 + $0x160] sm:$0x1] }
 0x10f   : > { %1712 = vst.msk [vmem:[#allocation3 + $0x20] sm:$0xff] %vm1707_vm8, %v1668_v38  ;;  %v1670_v54 = vpop.permute.xlu0 %1669  ;;  %v427_v38 = vld [vmem:[#allocation2 + $0x108] sm:$0x80]  ;;  %v1916_v58 = vrot.slane %v1914_v50, 7  ;;  %v609_v31 = vrot.slane %v607_v60, 7 }
 0x110   : > { %1675 = vrot.lane.b32.xlu1 %v1574_v12, %s3768_s4  ;;  %1713 = vst.msk [vmem:[#allocation3 + $0x28] sm:$0xff] %vm1707_vm8, %v1670_v54  ;;  %v571_v48 = vshrl.u32 %v427_v38, 16  ;;  %v4513_v1 = vor.u32 %v1921_v5, %v1920_v49  ;;  %v1069_v38 = vld [vmem:[#allocation2 + $0x108] sm:$0x80]  ;;  %v932_v49 = vshll.u32 %v782_v44, 16  ;;  %v2304_v59 = vrot.slane %v1921_v5, 1 }
 0x111   : > { %1677 = vrot.lane.b32.xlu0 %v1586_v16, %s3768_s4  ;;  %656 = vst.msk [vmem:[#allocation3 + $0x50] sm:$0xff] %vm216_vm0, %v569_v20  ;;  %v2130_v16 = vld [vmem:[#allocation2 + $0x118] sm:$0x1]  ;;  %v2295_v20 = vshll.u32 %v2136_v26, 16  ;;  %v435_v50 = vld [vmem:[#allocation2 + $0x168] sm:$0x80] }
 0x112   : > { %v2047_v57 = vpop.permute.xlu1 %2046  ;;  %v573_v55 = vrot.slane %v571_v48, 7  ;;  %v1924_v28 = vsel %vm437_vm2, %v1916_v58, %v4513_v1  ;;  %v619_v48 = vshrl.u32 %v435_v50, 16  ;;  %v788_v14 = vld [vmem:[#allocation2 + $0x160] sm:$0x1]  ;;  %v1071_v5 = vld [vmem:[#allocation2 + $0x120] sm:$0x80] }
 0x113   : > { %2095 = vst.msk [vmem:[#allocation3] sm:$0xff] %vm2094_vm10, %v2047_v57  ;;  %v2297_v37 = vrot.slane %v2295_v20, 1 }
 0x114   : > { %1394 = vrot.lane.b32.xlu1 %v4370_v42, %s3766_s8  ;;  %v2049_v42 = vpop.permute.xlu0 %2048 }
 0x115   : > { %2096 = vst.msk [vmem:[#allocation3 + $0x8] sm:$0xff] %vm2094_vm10, %v2049_v42  ;;  %1396 = vrot.lane.b32.xlu0 %v4400_v10, %s3766_s8 }
 0x116   : > { %v1958_v45 = vpop.permute.xlu1 %1957 }
 0x117   : > { %2002 = vst.msk [vmem:[#allocation3 + $0x20] sm:$0xff] %vm1997_vm9, %v1958_v45  ;;  %v2259_v45 = vshll.u32 %v2130_v16, 16  ;;  %v1202_v16 = vshrl.u32 %v1069_v38, 16  ;;  %v1079_v38 = vld [vmem:[#allocation2 + $0x180] sm:$0x80] }
 0x118   : > { %1965 = vrot.lane.b32.xlu1 %v1864_v0, %s3769_s25  ;;  %v699_v24 = vpop.permute.xlu0 %698  ;;  %v581_v0 = vsel %vm437_vm2, %v573_v55, %v580_v43  ;;  %v2138_v55 = vld [vmem:[#allocation2 + $0x178] sm:$0x1]  ;;  %v621_v43 = vrot.slane %v619_v48, 7 }
 0x119   : > { %745 = vst.msk [vmem:[#allocation3 + $0x10] sm:$0xff] %vm742_vm4, %v699_v24  ;;  %1967 = vrot.lane.b32.xlu0 %v1876_v51, %s3769_s25  ;;  %v3589_v51 = vld [vmem:[#allocation7 + $0x8] sm:$0xff]   ;;  %v616_v24 = vor.u32 %v614_v32, %v613_v17  ;;  %v968_v17 = vshll.u32 %v788_v14, 16 }
 0x11a   : > { %v2336_v18 = vpop.permute.xlu1 %2335  ;;  %657 = vst.msk [vmem:[#allocation3 + $0x58] sm:$0xff] %vm216_vm0, %v581_v0  ;;  %v3592_v32 = vld [vmem:[#allocation7 + $0x8] sm:$0xff]  }
 0x11b   : > { %2384 = vst.msk [vmem:[#allocation3] sm:$0xff] %vm2383_vm11, %v2336_v18  ;;  %v2261_v18 = vrot.slane %v2259_v45, 1  ;;  %v2307_v45 = vshll.u32 %v2138_v55, 16  ;;  %v970_v26 = vrot.slane %v968_v17, 1  ;;  %v1747_v14 = vld [vmem:[#allocation2 + $0x138] sm:$0x80] }
 0x11c   : > { %1683 = vrot.lane.b32.xlu1 %v1622_v52, %s3768_s4  ;;  %v2055_v12 = vpop.permute.xlu0 %2054  ;;  %v4527_v52 = vor.u32 %v2256_v3, %v1870_v53  ;;  %v617_v53 = vsel %vm437_vm2, %v609_v31, %v616_v24  ;;  %v934_v3 = vrot.slane %v932_v49, 1 }
 0x11d   : > { %2099 = vst.msk [vmem:[#allocation3 + $0x20] sm:$0xff] %vm2094_vm10, %v2055_v12  ;;  %1685 = vrot.lane.b32.xlu0 %v1634_v27, %s3768_s4  ;;  %v2309_v60 = vrot.slane %v2307_v45, 1  ;;  %v971_v20 = vsel %vm791_vm1, %v4474_v9, %v970_v26 }
 0x11e   : > { %v1960_v39 = vpop.permute.xlu1 %1959  ;;  %v2262_v15 = vsel %vm791_vm1, %v4527_v52, %v2261_v18  ;;  %660 = vst.msk [vmem:[#allocation3 + $0x70] sm:$0xff] %vm216_vm0, %v617_v53  ;;  %v935_v41 = vsel %vm791_vm1, %v4527_v52, %v934_v3 }
 0x11f   : > { %2003 = vst.msk [vmem:[#allocation3 + $0x28] sm:$0xff] %vm1997_vm9, %v1960_v39  ;;  %v436_v39 = vld [vmem:[#allocation2 + $0x170] sm:$0xff] }
 0x120   : > { %2062 = vrot.lane.b32.xlu1 %v4354_v33, %s3770_s5  ;;  %v701_v54 = vpop.permute.xlu0 %700  ;;  %v623_v12 = vshrl.u32 %v436_v39, 16  ;;  %v626_v29 = vshll.u32 %v436_v39, 16 }
 0x121   : > { %746 = vst.msk [vmem:[#allocation3 + $0x18] sm:$0xff] %vm742_vm4, %v701_v54  ;;  %2064 = vrot.lane.b32.xlu0 %v4430_v62, %s3770_s5 }
 0x122   : > { %v2338_v63 = vpop.permute.xlu1 %2337  ;;  %v2400_v57 = vld [vmem:[#allocation3] sm:$0xff]  ;;  %v625_v40 = vrot.slane %v623_v12, 7  ;;  %v1456_v12 = vld [vmem:[#allocation2 + $0x118] sm:$0x1] }
 0x123   : > { %2385 = vst.msk [vmem:[#allocation3 + $0x8] sm:$0xff] %vm2383_vm11, %v2338_v63  ;;  %3438 = vmatprep.mubr.msk.bf16.mxu0 %vm2424_vm12, %v2400_v57  ;;  %v1595_v50 = vshll.u32 %v1456_v12, 16 }
 0x124   : > { %1973 = vrot.lane.b32.xlu1 %v1912_v25, %s3769_s25  ;;  %v2057_v42 = vpop.permute.xlu0 %2056  ;;  %v628_v54 = vor.u32 %v626_v29, %v625_v40  ;;  %v1262_v40 = vshrl.u32 %v1079_v38, 16  ;;  %v2134_v38 = vld [vmem:[#allocation2 + $0x148] sm:$0x1] }
 0x125   : > { %2100 = vst.msk [vmem:[#allocation3 + $0x28] sm:$0xff] %vm2094_vm10, %v2057_v42  ;;  %714 = vrot.lane.b32.xlu0 %v4354_v33, %s3764_s18  ;;  %v922_v33 = vrot.slane %v920_v34, 1  ;;  %v4569_v34 = vor.u32 %v2304_v59, %v1918_v19 }
 0x126   : > { %v989_v13 = vpop.permute.xlu1 %988  ;;  %v629_v0 = vsel %vm437_vm2, %v621_v43, %v628_v54  ;;  %v1264_v55 = vrot.slane %v1262_v40, 7 }
 0x127   : > { %1035 = vst.msk [vmem:[#allocation3 + $0x10] sm:$0xff] %vm1032_vm5, %v989_v13  ;;  %v923_v25 = vsel %vm791_vm1, %v4442_v46, %v922_v33  ;;  %v2802_v46 = vsel %vm2437_vm3, %v3590_v7, 0  ;;  %v1204_v13 = vrot.slane %v1202_v16, 7  ;;  %v1077_v33 = vld [vmem:[#allocation2 + $0x168] sm:$0x80] }
 0x128   : > { %2351 = vrot.lane.b32.xlu1 %v2250_v61, %s3771_s11  ;;  %v707_v35 = vpop.permute.xlu0 %706  ;;  %v2298_v61 = vsel %vm791_vm1, %v4474_v9, %v2297_v37  ;;  %661 = vst.msk [vmem:[#allocation3 + $0x78] sm:$0xff] %vm216_vm0, %v629_v0 }
 0x129   : > { %749 = vst.msk [vmem:[#allocation3 + $0x30] sm:$0xff] %vm742_vm4, %v707_v35  ;;  %2070 = vrot.lane.b32.xlu0 %v4400_v10, %s3770_s5 }
 0x12a   : > { %v2344_v21 = vpop.permute.xlu1 %2343  ;;  %v2401_v22 = vld [vmem:[#allocation3 + $0x8] sm:$0xff] }
 0x12b   : > { %2388 = vst.msk [vmem:[#allocation3 + $0x20] sm:$0xff] %vm2383_vm11, %v2344_v21  ;;  %3439 = vmatmul.mubr.msk.bf16.vlgmr.msra.gmra.mrb[0].mxu0 %vm2424_vm12, %v2401_v22  ;;  %v1214_v21 = vshrl.u32 %v1071_v5, 16  ;;  %v790_v22 = vld [vmem:[#allocation2 + $0x178] sm:$0x1] }
 0x12c   : > { %1975 = vrot.lane.b32.xlu1 %v1924_v28, %s3769_s25  ;;  %3461 = vmatpush3.bf16.msra.mxu0 %v4487_v2  ;;  %v1278_v2 = vpop.permute.xlu0 %1277  ;;  %v980_v35 = vshll.u32 %v790_v22, 16 }
 0x12d   : > { %3462 = vmatprep.subr.bf16.mxu0 %v3589_v51  ;;  %1324 = vst.msk [vmem:[#allocation3 + $0x10] sm:$0xff] %vm1321_vm6, %v1278_v2  ;;  %716 = vrot.lane.b32.xlu0 %v4430_v62, %s3764_s18  ;;  %v1216_v24 = vrot.slane %v1214_v21, 7 }
 0x12e   : > { %v991_v27 = vpop.permute.xlu1 %990  ;;  %v982_v44 = vrot.slane %v980_v35, 1 }
 0x12f   : > { %1036 = vst.msk [vmem:[#allocation3 + $0x18] sm:$0xff] %vm1032_vm5, %v991_v27  ;;  %v1224_v27 = vsel %vm437_vm2, %v1216_v24, %v4280_v56 }
 0x130   : > { %2353 = vrot.lane.b32.xlu1 %v2262_v15, %s3771_s11  ;;  %3463 = vmatpush3.bf16.msra.mxu0 %v3589_v51  ;;  %v709_v58 = vpop.permute.xlu0 %708  ;;  %v1212_v51 = vsel %vm437_vm2, %v1204_v13, %v4463_v11  ;;  %v3593_v11 = vld [vmem:[#allocation7 + $0x10] ss:$0 sps:$4 sm:$0x33]   ;;  %v4586_v15 = vld [vmem:[#allocation2 + $0x188] sm:$0xff]  ;;  %v983_v56 = vsel %vm791_vm1, %v4569_v34, %v982_v44 }
 0x131   : > { %3490 = vmatprep.subr.msk.bf16.mxu0 %vm2437_vm3, %v3590_v7  ;;  %750 = vst.msk [vmem:[#allocation3 + $0x38] sm:$0xff] %vm742_vm4, %v709_v58  ;;  %2072 = vrot.lane.b32.xlu0 %v4478_v23, %s3770_s5  ;;  %v1250_v7 = vshrl.u32 %v1077_v33, 16  ;;  %v1266_v2 = vshrl.u32 %v4586_v15, 16  ;;  %v1269_v37 = vshll.u32 %v4586_v15, 16  ;;  %v1745_v58 = vld [vmem:[#allocation2 + $0x120] sm:$0x80] }
 0x132   : > { %v2346_v63 = vpop.permute.xlu1 %2345  ;;  %v2584_v57 = vld [vmem:[#allocation3 + $0x20] sm:$0xff]  ;;  %v1878_v0 = vshrl.u32 %v1745_v58, 16 }
 0x133   : > { %2389 = vst.msk [vmem:[#allocation3 + $0x28] sm:$0xff] %vm2383_vm11, %v2346_v63  ;;  %3452 = vmatprep.mubr.msk.bf16.mxu1 %vm2424_vm12, %v2584_v57  ;;  %v1252_v9 = vrot.slane %v1250_v7, 7  ;;  %v1268_v29 = vrot.slane %v1266_v2, 7  ;;  %v1597_v57 = vrot.slane %v1595_v50, 1 }
 0x134   : > { %1004 = vrot.lane.b32.xlu1 %v923_v25, %s3765_s20  ;;  %3465 = vmatpush3.bf16.msra.mxu0 %v2802_v46  ;;  %v1280_v42 = vpop.permute.xlu0 %1279  ;;  %v1458_v46 = vld [vmem:[#allocation2 + $0x130] sm:$0x1] }
 0x135   : > { %1325 = vst.msk [vmem:[#allocation3 + $0x18] sm:$0xff] %vm1321_vm6, %v1280_v42  ;;  %722 = vrot.lane.b32.xlu0 %v4400_v10, %s3764_s18  ;;  %v2310_v10 = vsel %vm791_vm1, %v4569_v34, %v2309_v60  ;;  %v1260_v63 = vsel %vm437_vm2, %v1252_v9, %v4513_v1  ;;  %v4615_v43 = vor.u32 %v1269_v37, %v1268_v29  ;;  %v1607_v54 = vshll.u32 %v1458_v46, 16  ;;  %v3595_v9 = vld [vmem:[#allocation2 + $0x128] sm:$0xff] }
 0x136   : > { %v997_v47 = vpop.permute.xlu1 %996  ;;  %v1598_v1 = vsel %vm791_vm1, %v4527_v52, %v1597_v57  ;;  %v1880_v42 = vrot.slane %v1878_v0, 7  ;;  %v1890_v60 = vshrl.u32 %v1747_v14, 16  ;;  %v3596_v57 = vld [vmem:[#allocation2 + $0x140] sm:$0xff] }
 0x137   : > { %1039 = vst.msk [vmem:[#allocation3 + $0x30] sm:$0xff] %vm1032_vm5, %v997_v47  ;;  %v1272_v3 = vsel %vm437_vm2, %v1264_v55, %v4615_v43  ;;  %v1609_v45 = vrot.slane %v1607_v54, 1  ;;  %v1464_v47 = vld [vmem:[#allocation2 + $0x178] sm:$0x1] }
 0x138   : > { %2359 = vrot.lane.b32.xlu1 %v2298_v61, %s3771_s11  ;;  %v999_v19 = vpop.permute.xlu0 %998  ;;  %v1643_v5 = vshll.u32 %v1464_v47, 16  ;;  %v1892_v21 = vrot.slane %v1890_v60, 7 }
 0x139   : > { %1040 = vst.msk [vmem:[#allocation3 + $0x38] sm:$0xff] %vm1032_vm5, %v999_v19  ;;  %1293 = vrot.lane.b32.xlu0 %v1212_v51, %s3767_s9  ;;  %v1652_v19 = vrot.slane %v1269_v37, 1 }
 0x13a   : > { %v1375_v28 = vpop.permute.xlu1 %1374  ;;  %v2585_v18 = vld [vmem:[#allocation3 + $0x28] sm:$0xff]  ;;  %v1900_v24 = vsel %vm437_vm2, %v1892_v21, %v4352_v30 }
 0x13b   : > { %1421 = vst.msk [vmem:[#allocation3 + $0x10] sm:$0xff] %vm1418_vm7, %v1375_v28  ;;  %3453 = vmatmul.mubr.msk.bf16.vlgmr.msra.gmra.mrb[0].mxu1 %vm2424_vm12, %v2585_v18  ;;  %v1888_v28 = vsel %vm437_vm2, %v1880_v42, %v4300_v4  ;;  %v1645_v18 = vrot.slane %v1643_v5, 1  ;;  %v4651_v35 = vor.u32 %v1652_v19, %v1266_v2 }
 0x13c   : > { %1006 = vrot.lane.b32.xlu1 %v935_v41, %s3765_s20  ;;  %3475 = vmatpush3.bf16.msra.mxu1 %v4540_v36  ;;  %v1377_v53 = vpop.permute.xlu0 %1376  ;;  %v2983_v36 = vsel %vm2437_vm3, %v3593_v11, 0  ;;  %v1610_v41 = vsel %vm791_vm1, %v4298_v6, %v1609_v45 }
 0x13d   : > { %3476 = vmatprep.subr.bf16.mxu1 %v3592_v32  ;;  %1422 = vst.msk [vmem:[#allocation3 + $0x18] sm:$0xff] %vm1418_vm7, %v1377_v53  ;;  %724 = vrot.lane.b32.xlu0 %v4478_v23, %s3764_s18  ;;  %v1646_v4 = vsel %vm791_vm1, %v4569_v34, %v1645_v18  ;;  %v2132_v53 = vld [vmem:[#allocation2 + $0x130] sm:$0x1] }
 0x13e   : > { %v1286_v31 = vpop.permute.xlu1 %1285  ;;  %v2271_v30 = vshll.u32 %v2132_v53, 16 }
 0x13f   : > { %1328 = vst.msk [vmem:[#allocation3 + $0x30] sm:$0xff] %vm1321_vm6, %v1286_v31 }
 0x140   : > { %2361 = vrot.lane.b32.xlu1 %v2310_v10, %s3771_s11  ;;  %3477 = vmatpush3.bf16.msra.mxu1 %v3592_v32  ;;  %v1288_v25 = vpop.permute.xlu0 %1287  ;;  %v1466_v32 = vld [vmem:[#allocation2 + $0x190] sm:$0x1]  ;;  %v1753_v10 = vld [vmem:[#allocation2 + $0x180] sm:$0x80] }
 0x141   : > { %3491 = vmatprep.subr.msk.bf16.mxu1 %vm2437_vm3, %v3593_v11  ;;  %1329 = vst.msk [vmem:[#allocation3 + $0x38] sm:$0xff] %vm1321_vm6, %v1288_v25  ;;  %1295 = vrot.lane.b32.xlu0 %v1224_v27, %s3767_s9  ;;  %v1655_v22 = vshll.u32 %v1466_v32, 16  ;;  %v4639_v11 = vld [vmem:[#allocation2 + $0x1a0] sm:$0xff] }
 0x142   : > { %v1664_v39 = vpop.permute.xlu1 %1663  ;;  %v1945_v2 = vshll.u32 %v4639_v11, 16 }
 0x143   : > { %1710 = vst.msk [vmem:[#allocation3 + $0x10] sm:$0xff] %vm1707_vm8, %v1664_v39  ;;  %v1657_v33 = vrot.slane %v1655_v22, 1 }
 0x144   : > { %1012 = vrot.lane.b32.xlu1 %v971_v20, %s3765_s20  ;;  %3479 = vmatpush3.bf16.msra.mxu1 %v2983_v36  ;;  %v1666_v49 = vpop.permute.xlu0 %1665  ;;  %v1942_v20 = vshrl.u32 %v4639_v11, 16  ;;  %v1755_v36 = vld [vmem:[#allocation2 + $0x198] sm:$0x80] }
 0x145   : > { %1711 = vst.msk [vmem:[#allocation3 + $0x18] sm:$0xff] %vm1707_vm8, %v1666_v49  ;;  %1014 = vrot.lane.b32.xlu0 %v983_v56, %s3765_s20  ;;  %v1658_v27 = vsel %vm791_vm1, %v4651_v35, %v1657_v33  ;;  %v1938_v44 = vshrl.u32 %v1755_v36, 16  ;;  %v2283_v49 = vshll.u32 %v2134_v38, 16  ;;  %s3659_s20 = sshll.u32 %s3772_s26, 4  ;;  %s3660_s20 = int_to_ptr.vmem [resolvable:$false] %s3659_s20 }
 0x146   : > { %v1383_v48 = vpop.permute.xlu1 %1382  ;;  %v1944_v12 = vrot.slane %v1942_v20, 7  ;;  %p3662_p10 = scmp.lt.s32.totalorder %s4840_s23, %s3660_s20 }
 0x147   : > { %1425 = vst.msk [vmem:[#allocation3 + $0x30] sm:$0xff] %vm1418_vm7, %v1383_v48  ;;  %v2273_v48 = vrot.slane %v2271_v30, 1  ;;  %v1940_v29 = vrot.slane %v1938_v44, 7  ;;  %v2285_v54 = vrot.slane %v2283_v49, 1 }
 0x148   : > { %1390 = vrot.lane.b32.xlu1 %v4430_v62, %s3766_s8  ;;  %v1385_v59 = vpop.permute.xlu0 %1384  ;;  %v3594_v62 = vld [vmem:[#allocation2 + $0x128] sm:$0xff]  ;;  %v1947_v37 = vor.u32 %v1945_v2, %v1944_v12 }
 0x149   : > { %1426 = vst.msk [vmem:[#allocation3 + $0x38] sm:$0xff] %vm1418_vm7, %v1385_v59  ;;  %1392 = vrot.lane.b32.xlu0 %v3594_v62, %s3766_s8  ;;  %v2142_v59 = vld [vmem:[#allocation2 + $0x1a8] sm:$0x1] }
 0x14a   : > { %v1954_v16 = vpop.permute.xlu1 %1953  ;;  %v2331_v0 = vshll.u32 %v2142_v59, 16 }
 0x14b   : > { %2000 = vst.msk [vmem:[#allocation3 + $0x10] sm:$0xff] %vm1997_vm9, %v1954_v16  ;;  %v2274_v16 = vsel %vm791_vm1, %v4298_v6, %v2273_v48  ;;  %v2286_v6 = vsel %vm791_vm1, %v4332_v8, %v2285_v54 }
 0x14c   : > { %1301 = vrot.lane.b32.xlu1 %v1260_v63, %s3767_s9  ;;  %v1956_v13 = vpop.permute.xlu0 %1955  ;;  %v2140_v63 = vld [vmem:[#allocation2 + $0x190] sm:$0x1]  ;;  %v2333_v14 = vrot.slane %v2331_v0, 1 }
 0x14d   : > { %2001 = vst.msk [vmem:[#allocation3 + $0x18] sm:$0xff] %vm1997_vm9, %v1956_v13  ;;  %1303 = vrot.lane.b32.xlu0 %v1272_v3, %s3767_s9  ;;  %v2319_v58 = vshll.u32 %v2140_v63, 16 }
 0x14e   : > { %v1672_v61 = vpop.permute.xlu1 %1671 }
 0x14f   : > { %1714 = vst.msk [vmem:[#allocation3 + $0x30] sm:$0xff] %vm1707_vm8, %v1672_v61  ;;  %v2321_v45 = vrot.slane %v2319_v58, 1 }
 0x150   : > { %1679 = vrot.lane.b32.xlu1 %v1598_v1, %s3768_s4  ;;  %v1674_v17 = vpop.permute.xlu0 %1673  ;;  %v2328_v1 = vrot.slane %v1945_v2, 1 }
 0x151   : > { %1715 = vst.msk [vmem:[#allocation3 + $0x38] sm:$0xff] %vm1707_vm8, %v1674_v17  ;;  %1681 = vrot.lane.b32.xlu0 %v1610_v41, %s3768_s4  ;;  %v2322_v5 = vsel %vm791_vm1, %v4651_v35, %v2321_v45 }
 0x152   : > { %v2051_v52 = vpop.permute.xlu1 %2050  ;;  %v2329_v13 = vor.u32 %v2328_v1, %v1942_v20 }
 0x153   : > { %2097 = vst.msk [vmem:[#allocation3 + $0x10] sm:$0xff] %vm2094_vm10, %v2051_v52 }
 0x154   : > { %1398 = vrot.lane.b32.xlu1 %v4478_v23, %s3766_s8  ;;  %v2053_v26 = vpop.permute.xlu0 %2052  ;;  %v1926_v23 = vshrl.u32 %v1753_v10, 16 }
 0x155   : > { %2098 = vst.msk [vmem:[#allocation3 + $0x18] sm:$0xff] %vm2094_vm10, %v2053_v26  ;;  %1400 = vrot.lane.b32.xlu0 %v4586_v15, %s3766_s8  ;;  %s3661_s8 = scalar_lea.vmem %s3660_s20, 4096 }
 0x156   : > { %v1962_v51 = vpop.permute.xlu1 %1961  ;;  %v1928_v34 = vrot.slane %v1926_v23, 7  ;;  %p3663_p13 = scmp.lt.s32.totalorder %s3661_s8, %s3655_s10 }
 0x157   : > { %2004 = vst.msk [vmem:[#allocation3 + $0x30] sm:$0xff] %vm1997_vm9, %v1962_v51 }
 0x158   : > { %1969 = vrot.lane.b32.xlu1 %v1888_v28, %s3769_s25  ;;  %v711_v7 = vpop.permute.xlu0 %710  ;;  %v1936_v50 = vsel %vm437_vm2, %v1928_v34, %v4615_v43  ;;  %v1948_v43 = vsel %vm437_vm2, %v1940_v29, %v1947_v37  ;;  %p3664_p3 = por %p3663_p13, %p3662_p10 }
 0x159   : > { %751 = vst.msk [vmem:[#allocation3 + $0x40] sm:$0xff] %vm742_vm4, %v711_v7  ;;  %1971 = vrot.lane.b32.xlu0 %v1900_v24, %s3769_s25 }
 0x15a   : > { %v2340_v31 = vpop.permute.xlu1 %2339  ;;  %p3665_p7 = pnand %p3664_p3, %p3658_p8 }
 0x15b   : > { %2386 = vst.msk [vmem:[#allocation3 + $0x10] sm:$0xff] %vm2383_vm11, %v2340_v31 }
 0x15c   : > { %1687 = vrot.lane.b32.xlu1 %v1646_v4, %s3768_s4  ;;  %v2059_v25 = vpop.permute.xlu0 %2058 }
 0x15d   : > { %2101 = vst.msk [vmem:[#allocation3 + $0x30] sm:$0xff] %vm2094_vm10, %v2059_v25  ;;  %1689 = vrot.lane.b32.xlu0 %v1658_v27, %s3768_s4 }
 0x15e   : > { %v1964_v39 = vpop.permute.xlu1 %1963 }
 0x15f   : > { %2005 = vst.msk [vmem:[#allocation3 + $0x38] sm:$0xff] %vm1997_vm9, %v1964_v39 }
 0x160   : > { %2066 = vrot.lane.b32.xlu1 %v3595_v9, %s3770_s5  ;;  %v713_v46 = vpop.permute.xlu0 %712 }
 0x161   : > { %752 = vst.msk [vmem:[#allocation3 + $0x48] sm:$0xff] %vm742_vm4, %v713_v46  ;;  %2068 = vrot.lane.b32.xlu0 %v3596_v57, %s3770_s5 }
 0x162   : > { %v2342_v56 = vpop.permute.xlu1 %2341  ;;  %v2402_v40 = vld [vmem:[#allocation3 + $0x10] sm:$0xff] }
 0x163   : > { %2387 = vst.msk [vmem:[#allocation3 + $0x18] sm:$0xff] %vm2383_vm11, %v2342_v56  ;;  %3442 = vmatprep.mubr.msk.bf16.mxu0 %vm2424_vm12, %v2402_v40 }
 0x164   : > { %1977 = vrot.lane.b32.xlu1 %v1936_v50, %s3769_s25  ;;  %v2061_v62 = vpop.permute.xlu0 %2060 }
 0x165   : > { %2102 = vst.msk [vmem:[#allocation3 + $0x38] sm:$0xff] %vm2094_vm10, %v2061_v62  ;;  %1979 = vrot.lane.b32.xlu0 %v1948_v43, %s3769_s25 }
 0x166   : > { %v1001_v55 = vpop.permute.xlu1 %1000 }
 0x167   : > { %1041 = vst.msk [vmem:[#allocation3 + $0x40] sm:$0xff] %vm1032_vm5, %v1001_v55 }
 0x168   : > { %2355 = vrot.lane.b32.xlu1 %v2274_v16, %s3771_s11  ;;  %v719_v47 = vpop.permute.xlu0 %718 }
 0x169   : > { %755 = vst.msk [vmem:[#allocation3 + $0x60] sm:$0xff] %vm742_vm4, %v719_v47  ;;  %2357 = vrot.lane.b32.xlu0 %v2286_v6, %s3771_s11 }
 0x16a   : > { %v2348_v61 = vpop.permute.xlu1 %2347  ;;  %v2403_v3 = vld [vmem:[#allocation3 + $0x18] sm:$0xff] }
 0x16b   : > { %2390 = vst.msk [vmem:[#allocation3 + $0x30] sm:$0xff] %vm2383_vm11, %v2348_v61  ;;  %3443 = vmatmul.mubr.msk.bf16.gmra.mrb[4].mxu0 %vm2424_vm12, %v2403_v3 }
 0x16c   : > { %2074 = vrot.lane.b32.xlu1 %v4586_v15, %s3770_s5  ;;  %v1290_v8 = vpop.permute.xlu0 %1289  ;;  %v2334_v15 = vsel %vm791_vm1, %v2329_v13, %v2333_v14 }
 0x16d   : > { %1330 = vst.msk [vmem:[#allocation3 + $0x40] sm:$0xff] %vm1321_vm6, %v1290_v8  ;;  %2363 = vrot.lane.b32.xlu0 %v2322_v5, %s3771_s11 }
 0x16e   : > { %v1003_v42 = vpop.permute.xlu1 %1002 }
 0x16f   : > { %1042 = vst.msk [vmem:[#allocation3 + $0x48] sm:$0xff] %vm1032_vm5, %v1003_v42 }
 0x170   : > { %2076 = vrot.lane.b32.xlu1 %v4639_v11, %s3770_s5  ;;  %v721_v60 = vpop.permute.xlu0 %720 }
 0x171   : > { %756 = vst.msk [vmem:[#allocation3 + $0x68] sm:$0xff] %vm742_vm4, %v721_v60 }
 0x172   : > { %v2350_v52 = vpop.permute.xlu1 %2349  ;;  %v2586_v41 = vld [vmem:[#allocation3 + $0x30] sm:$0xff] }
 0x173   : > { %2391 = vst.msk [vmem:[#allocation3 + $0x38] sm:$0xff] %vm2383_vm11, %v2350_v52  ;;  %3456 = vmatprep.mubr.msk.bf16.mxu1 %vm2424_vm12, %v2586_v41 }
 0x174   : > { %2365 = vrot.lane.b32.xlu1 %v2334_v15, %s3771_s11  ;;  %v1292_v32 = vpop.permute.xlu0 %1291 }
 0x175   : > { %1331 = vst.msk [vmem:[#allocation3 + $0x48] sm:$0xff] %vm1321_vm6, %v1292_v32 }
 0x176   : > { %v1009_v17 = vpop.permute.xlu1 %1008 }
 0x177   : > { %1045 = vst.msk [vmem:[#allocation3 + $0x60] sm:$0xff] %vm1032_vm5, %v1009_v17 }
 0x178   : > { %v1011_v51 = vpop.permute.xlu0 %1010 }
 0x179   : > { %1046 = vst.msk [vmem:[#allocation3 + $0x68] sm:$0xff] %vm1032_vm5, %v1011_v51 }
 0x17a   : > { %v1387_v28 = vpop.permute.xlu1 %1386  ;;  %v2587_v18 = vld [vmem:[#allocation3 + $0x38] sm:$0xff] }
 0x17b   : > { %1427 = vst.msk [vmem:[#allocation3 + $0x40] sm:$0xff] %vm1418_vm7, %v1387_v28  ;;  %3457 = vmatmul.mubr.msk.bf16.gmra.mrb[4].mxu1 %vm2424_vm12, %v2587_v18 }
 0x17c   : > { %v1389_v19 = vpop.permute.xlu0 %1388 }
 0x17d   : > { %1428 = vst.msk [vmem:[#allocation3 + $0x48] sm:$0xff] %vm1418_vm7, %v1389_v19 }
 0x17e   : > { %v1298_v21 = vpop.permute.xlu1 %1297 }
 0x17f   : > { %1334 = vst.msk [vmem:[#allocation3 + $0x60] sm:$0xff] %vm1321_vm6, %v1298_v21 }
 0x180   : > { %v1300_v10 = vpop.permute.xlu0 %1299 }
 0x181   : > { %1335 = vst.msk [vmem:[#allocation3 + $0x68] sm:$0xff] %vm1321_vm6, %v1300_v10 }
 0x182   : > { %v1676_v22 = vpop.permute.xlu1 %1675 }
 0x183   : > { %1716 = vst.msk [vmem:[#allocation3 + $0x40] sm:$0xff] %vm1707_vm8, %v1676_v22 }
 0x184   : > { %v1678_v11 = vpop.permute.xlu0 %1677 }
 0x185   : > { %1717 = vst.msk [vmem:[#allocation3 + $0x48] sm:$0xff] %vm1707_vm8, %v1678_v11 }
 0x186   : > { %v1395_v26 = vpop.permute.xlu1 %1394 }
 0x187   : > { %1431 = vst.msk [vmem:[#allocation3 + $0x60] sm:$0xff] %vm1418_vm7, %v1395_v26 }
 0x188   : > { %v1397_v23 = vpop.permute.xlu0 %1396 }
 0x189   : > { %1432 = vst.msk [vmem:[#allocation3 + $0x68] sm:$0xff] %vm1418_vm7, %v1397_v23 }
 0x18a   : > { %v1966_v4 = vpop.permute.xlu1 %1965 }
 0x18b   : > { %2006 = vst.msk [vmem:[#allocation3 + $0x40] sm:$0xff] %vm1997_vm9, %v1966_v4 }
 0x18c   : > { %v1968_v24 = vpop.permute.xlu0 %1967 }
 0x18d   : > { %2007 = vst.msk [vmem:[#allocation3 + $0x48] sm:$0xff] %vm1997_vm9, %v1968_v24 }
 0x18e   : > { %v1684_v31 = vpop.permute.xlu1 %1683 }
 0x18f   : > { %1720 = vst.msk [vmem:[#allocation3 + $0x60] sm:$0xff] %vm1707_vm8, %v1684_v31 }
 0x190   : > { %v1686_v33 = vpop.permute.xlu0 %1685 }
 0x191   : > { %1721 = vst.msk [vmem:[#allocation3 + $0x68] sm:$0xff] %vm1707_vm8, %v1686_v33 }
 0x192   : > { %v2063_v35 = vpop.permute.xlu1 %2062 }
 0x193   : > { %2103 = vst.msk [vmem:[#allocation3 + $0x40] sm:$0xff] %vm2094_vm10, %v2063_v35 }
 0x194   : > { %v2065_v20 = vpop.permute.xlu0 %2064 }
 0x195   : > { %2104 = vst.msk [vmem:[#allocation3 + $0x48] sm:$0xff] %vm2094_vm10, %v2065_v20 }
 0x196   : > { %v1974_v53 = vpop.permute.xlu1 %1973 }
 0x197   : > { %2010 = vst.msk [vmem:[#allocation3 + $0x60] sm:$0xff] %vm1997_vm9, %v1974_v53 }
 0x198   : > { %v715_v36 = vpop.permute.xlu0 %714 }
 0x199   : > { %753 = vst.msk [vmem:[#allocation3 + $0x50] sm:$0xff] %vm742_vm4, %v715_v36 }
 0x19a   : > { %v2352_v7 = vpop.permute.xlu1 %2351 }
 0x19b   : > { %2392 = vst.msk [vmem:[#allocation3 + $0x40] sm:$0xff] %vm2383_vm11, %v2352_v7 }
 0x19c   : > { %v2071_v30 = vpop.permute.xlu0 %2070 }
 0x19d   : > { %2107 = vst.msk [vmem:[#allocation3 + $0x60] sm:$0xff] %vm2094_vm10, %v2071_v30 }
 0x19e   : > { %v1976_v34 = vpop.permute.xlu1 %1975 }
 0x19f   : > { %2011 = vst.msk [vmem:[#allocation3 + $0x68] sm:$0xff] %vm1997_vm9, %v1976_v34 }
 0x1a0   : > { %v717_v44 = vpop.permute.xlu0 %716 }
 0x1a1   : > { %754 = vst.msk [vmem:[#allocation3 + $0x58] sm:$0xff] %vm742_vm4, %v717_v44 }
 0x1a2   : > { %v2354_v39 = vpop.permute.xlu1 %2353  ;;  %v2765_v27 = vld [vmem:[#allocation3 + $0x40] sm:$0xff] }
 0x1a3   : > { %2393 = vst.msk [vmem:[#allocation3 + $0x48] sm:$0xff] %vm2383_vm11, %v2354_v39  ;;  %3466 = vmatprep.mubr.msk.bf16.mxu0 %vm2424_vm12, %v2765_v27 }
 0x1a4   : > { %v2073_v2 = vpop.permute.xlu0 %2072 }
 0x1a5   : > { %2108 = vst.msk [vmem:[#allocation3 + $0x68] sm:$0xff] %vm2094_vm10, %v2073_v2 }
 0x1a6   : > { %v1005_v12 = vpop.permute.xlu1 %1004 }
 0x1a7   : > { %1043 = vst.msk [vmem:[#allocation3 + $0x50] sm:$0xff] %vm1032_vm5, %v1005_v12 }
 0x1a8   : > { %v723_v9 = vpop.permute.xlu0 %722 }
 0x1a9   : > { %757 = vst.msk [vmem:[#allocation3 + $0x70] sm:$0xff] %vm742_vm4, %v723_v9 }
 0x1aa   : > { %v2360_v25 = vpop.permute.xlu1 %2359  ;;  %v2766_v38 = vld [vmem:[#allocation3 + $0x48] sm:$0xff] }
 0x1ab   : > { %2396 = vst.msk [vmem:[#allocation3 + $0x60] sm:$0xff] %vm2383_vm11, %v2360_v25  ;;  %3467 = vmatmul.mubr.msk.bf16.vlgmr.msra.gmra.mrb[8].mxu0 %vm2424_vm12, %v2766_v38 }
 0x1ac   : > { %v1294_v48 = vpop.permute.xlu0 %1293 }
 0x1ad   : > { %1332 = vst.msk [vmem:[#allocation3 + $0x50] sm:$0xff] %vm1321_vm6, %v1294_v48 }
 0x1ae   : > { %v1007_v50 = vpop.permute.xlu1 %1006 }
 0x1af   : > { %1044 = vst.msk [vmem:[#allocation3 + $0x58] sm:$0xff] %vm1032_vm5, %v1007_v50 }
 0x1b0   : > { %v725_v29 = vpop.permute.xlu0 %724 }
 0x1b1   : > { %758 = vst.msk [vmem:[#allocation3 + $0x78] sm:$0xff] %vm742_vm4, %v725_v29 }
 0x1b2   : > { %v2362_v56 = vpop.permute.xlu1 %2361  ;;  %v2946_v40 = vld [vmem:[#allocation3 + $0x60] sm:$0xff] }
 0x1b3   : > { %2397 = vst.msk [vmem:[#allocation3 + $0x68] sm:$0xff] %vm2383_vm11, %v2362_v56  ;;  %3480 = vmatprep.mubr.msk.bf16.mxu1 %vm2424_vm12, %v2946_v40 }
 0x1b4   : > { %v1296_v49 = vpop.permute.xlu0 %1295 }
 0x1b5   : > { %1333 = vst.msk [vmem:[#allocation3 + $0x58] sm:$0xff] %vm1321_vm6, %v1296_v49 }
 0x1b6   : > { %v1013_v37 = vpop.permute.xlu1 %1012 }
 0x1b7   : > { %1047 = vst.msk [vmem:[#allocation3 + $0x70] sm:$0xff] %vm1032_vm5, %v1013_v37 }
 0x1b8   : > { %v1015_v57 = vpop.permute.xlu0 %1014 }
 0x1b9   : > { %1048 = vst.msk [vmem:[#allocation3 + $0x78] sm:$0xff] %vm1032_vm5, %v1015_v57 }
 0x1ba   : > { %v1391_v46 = vpop.permute.xlu1 %1390  ;;  %v2947_v63 = vld [vmem:[#allocation3 + $0x68] sm:$0xff] }
 0x1bb   : > { %1429 = vst.msk [vmem:[#allocation3 + $0x50] sm:$0xff] %vm1418_vm7, %v1391_v46  ;;  %3481 = vmatmul.mubr.msk.bf16.vlgmr.msra.gmra.mrb[8].mxu1 %vm2424_vm12, %v2947_v63 }
 0x1bc   : > { %v1393_v55 = vpop.permute.xlu0 %1392 }
 0x1bd   : > { %1430 = vst.msk [vmem:[#allocation3 + $0x58] sm:$0xff] %vm1418_vm7, %v1393_v55 }
 0x1be   : > { %v1302_v16 = vpop.permute.xlu1 %1301 }
 0x1bf   : > { %1336 = vst.msk [vmem:[#allocation3 + $0x70] sm:$0xff] %vm1321_vm6, %v1302_v16 }
 0x1c0   : > { %v1304_v54 = vpop.permute.xlu0 %1303 }
 0x1c1   : > { %1337 = vst.msk [vmem:[#allocation3 + $0x78] sm:$0xff] %vm1321_vm6, %v1304_v54 }
 0x1c2   : > { %v1680_v43 = vpop.permute.xlu1 %1679 }
 0x1c3   : > { %1718 = vst.msk [vmem:[#allocation3 + $0x50] sm:$0xff] %vm1707_vm8, %v1680_v43 }
 0x1c4   : > { %v1682_v59 = vpop.permute.xlu0 %1681 }
 0x1c5   : > { %1719 = vst.msk [vmem:[#allocation3 + $0x58] sm:$0xff] %vm1707_vm8, %v1682_v59 }
 0x1c6   : > { %v1399_v58 = vpop.permute.xlu1 %1398 }
 0x1c7   : > { %1433 = vst.msk [vmem:[#allocation3 + $0x70] sm:$0xff] %vm1418_vm7, %v1399_v58 }
 0x1c8   : > { %v1401_v1 = vpop.permute.xlu0 %1400 }
 0x1c9   : > { %1434 = vst.msk [vmem:[#allocation3 + $0x78] sm:$0xff] %vm1418_vm7, %v1401_v1 }
 0x1ca   : > { %v1970_v62 = vpop.permute.xlu1 %1969 }
 0x1cb   : > { %2008 = vst.msk [vmem:[#allocation3 + $0x50] sm:$0xff] %vm1997_vm9, %v1970_v62 }
 0x1cc   : > { %v1972_v61 = vpop.permute.xlu0 %1971 }
 0x1cd   : > { %2009 = vst.msk [vmem:[#allocation3 + $0x58] sm:$0xff] %vm1997_vm9, %v1972_v61 }
 0x1ce   : > { %v1688_v0 = vpop.permute.xlu1 %1687 }
 0x1cf   : > { %1722 = vst.msk [vmem:[#allocation3 + $0x70] sm:$0xff] %vm1707_vm8, %v1688_v0 }
 0x1d0   : > { %v1690_v6 = vpop.permute.xlu0 %1689 }
 0x1d1   : > { %1723 = vst.msk [vmem:[#allocation3 + $0x78] sm:$0xff] %vm1707_vm8, %v1690_v6 }
 0x1d2   : > { %v2067_v3 = vpop.permute.xlu1 %2066 }
 0x1d3   : > { %2105 = vst.msk [vmem:[#allocation3 + $0x50] sm:$0xff] %vm2094_vm10, %v2067_v3 }
 0x1d4   : > { %v2069_v47 = vpop.permute.xlu0 %2068 }
 0x1d5   : > { %2106 = vst.msk [vmem:[#allocation3 + $0x58] sm:$0xff] %vm2094_vm10, %v2069_v47 }
 0x1d6   : > { %v1978_v45 = vpop.permute.xlu1 %1977 }
 0x1d7   : > { %2012 = vst.msk [vmem:[#allocation3 + $0x70] sm:$0xff] %vm1997_vm9, %v1978_v45 }
 0x1d8   : > { %v1980_v14 = vpop.permute.xlu0 %1979 }
 0x1d9   : > { %2013 = vst.msk [vmem:[#allocation3 + $0x78] sm:$0xff] %vm1997_vm9, %v1980_v14 }
 0x1da   : > { %v2356_v13 = vpop.permute.xlu1 %2355 }
 0x1db   : > { %2394 = vst.msk [vmem:[#allocation3 + $0x50] sm:$0xff] %vm2383_vm11, %v2356_v13 }
 0x1dc   : > { %v2358_v5 = vpop.permute.xlu0 %2357 }
 0x1dd   : > { %2395 = vst.msk [vmem:[#allocation3 + $0x58] sm:$0xff] %vm2383_vm11, %v2358_v5 }
 0x1de   : > { %v2075_v42 = vpop.permute.xlu1 %2074 }
 0x1df   : > { %2109 = vst.msk [vmem:[#allocation3 + $0x70] sm:$0xff] %vm2094_vm10, %v2075_v42 }
 0x1e0   : > { %v2364_v52 = vpop.permute.xlu0 %2363 }
 0x1e1   : > { %2398 = vst.msk [vmem:[#allocation3 + $0x70] sm:$0xff] %vm2383_vm11, %v2364_v52 }
 0x1e2   : > { %v2077_v8 = vpop.permute.xlu1 %2076  ;;  %v2767_v15 = vld [vmem:[#allocation3 + $0x50] sm:$0xff] }
 0x1e3   : > { %2110 = vst.msk [vmem:[#allocation3 + $0x78] sm:$0xff] %vm2094_vm10, %v2077_v8  ;;  %3470 = vmatprep.mubr.msk.bf16.mxu0 %vm2424_vm12, %v2767_v15 }
 0x1e4   : > { %v2768_v60 = vld [vmem:[#allocation3 + $0x58] sm:$0xff] }
 0x1e5   : > { %3471 = vmatmul.mubr.msk.bf16.gmra.mrb[12].mxu0 %vm2424_vm12, %v2768_v60 }
 0x1e6   : > { %v2366_v41 = vpop.permute.xlu1 %2365 }
 0x1e7   : > { %2399 = vst.msk [vmem:[#allocation3 + $0x78] sm:$0xff] %vm2383_vm11, %v2366_v41 }
 0x1e8   : > { %v2948_v17 = vld [vmem:[#allocation3 + $0x70] sm:$0xff] }
 0x1e9   : > { %3484 = vmatprep.mubr.msk.bf16.mxu1 %vm2424_vm12, %v2948_v17 }
 0x1ee   : > { %v2949_v32 = vld [vmem:[#allocation3 + $0x78] sm:$0xff] }
 0x1ef   : > { %3485 = vmatmul.mubr.msk.bf16.gmra.mrb[12].mxu1 %vm2424_vm12, %v2949_v32 }
 0x1fe   : > { %v3440_v28 = vpop.f32.mrb[0].mxu0 }
 0x1ff   : > { %v3373_v18 = vpack.c.bf16 %v3440_v28, %v3440_v28  ;;  %v2475_v51 = vpop.f32.mrb[1].mxu0  ;;  %v2563_v31 = vmul.f32 %v3440_v28, %v3440_v28 }
 0x200   : > { %v3371_v21 = vpack.c.bf16 %v2475_v51, %v2475_v51  ;;  %v3441_v19 = vpop.f32.mrb[2].mxu0  ;;  %v2561_v26 = vmul.f32 %v2475_v51, %v2475_v51 }
 0x201   : > { %2541 = vst.msk [vmem:[%s4767_s27 + $0x8] sm:$0xf] %vm2538_vm13, %v3373_v18  ;;  %v3374_v22 = vpack.c.bf16 %v3441_v19, %v3441_v19  ;;  %v2478_v10 = vpop.f32.mrb[3].mxu0  ;;  %v2564_v33 = vmul.f32 %v3441_v19, %v3441_v19 }
 0x202   : > { %2539 = vst.msk [vmem:[%s4767_s27] sm:$0xf] %vm2538_vm13, %v3371_v21  ;;  %v3372_v11 = vpack.c.bf16 %v2478_v10, %v2478_v10  ;;  %v2547_v4 = vadd.f32 %v2478_v10, %v2475_v51  ;;  %v2562_v23 = vmul.f32 %v2478_v10, %v2478_v10 }
 0x203   : > { %2542 = vst.msk [vmem:[%s4767_s27 + $0xc] sm:$0xf] %vm2538_vm13, %v3374_v22 }
 0x204   : > { %2540 = vst.msk [vmem:[%s4767_s27 + $0x4] sm:$0xf] %vm2538_vm13, %v3372_v11  ;;  %v2548_v24 = vadd.f32 %v3440_v28, %v2547_v4  ;;  %v2569_v35 = vadd.f32 %v2562_v23, %v2561_v26 }
 0x206   : > { %v2570_v53 = vadd.f32 %v2569_v35, %v2563_v31  ;;  %v2549_v20 = vadd.f32 %v3441_v19, %v2548_v24 }
 0x208   : > { %v2571_v7 = vadd.f32 %v2570_v53, %v2564_v33 }
 0x20e   : > { %v3454_v36 = vpop.f32.mrb[0].mxu1 }
 0x20f   : > { %v3381_v34 = vpack.c.bf16 %v3454_v36, %v3454_v36  ;;  %v2657_v30 = vpop.f32.mrb[1].mxu1  ;;  %v2744_v50 = vmul.f32 %v3454_v36, %v3454_v36 }
 0x210   : > { %v3379_v39 = vpack.c.bf16 %v2657_v30, %v2657_v30  ;;  %v3455_v27 = vpop.f32.mrb[2].mxu1  ;;  %v2742_v2 = vmul.f32 %v2657_v30, %v2657_v30 }
 0x211   : > { %2722 = vst.msk [vmem:[%s4767_s27 + $0x28] sm:$0xf] %vm2538_vm13, %v3381_v34  ;;  %v3382_v44 = vpack.c.bf16 %v3455_v27, %v3455_v27  ;;  %v2660_v12 = vpop.f32.mrb[3].mxu1  ;;  %v2745_v40 = vmul.f32 %v3455_v27, %v3455_v27 }
 0x212   : > { %2720 = vst.msk [vmem:[%s4767_s27 + $0x20] sm:$0xf] %vm2538_vm13, %v3379_v39  ;;  %v3380_v25 = vpack.c.bf16 %v2660_v12, %v2660_v12  ;;  %v2728_v38 = vadd.f32 %v2660_v12, %v2657_v30  ;;  %v2743_v9 = vmul.f32 %v2660_v12, %v2660_v12 }
 0x213   : > { %2723 = vst.msk [vmem:[%s4767_s27 + $0x2c] sm:$0xf] %vm2538_vm13, %v3382_v44 }
 0x214   : > { %2721 = vst.msk [vmem:[%s4767_s27 + $0x24] sm:$0xf] %vm2538_vm13, %v3380_v25  ;;  %v2729_v48 = vadd.f32 %v3454_v36, %v2728_v38  ;;  %v2750_v56 = vadd.f32 %v2743_v9, %v2742_v2 }
 0x216   : > { %v2751_v29 = vadd.f32 %v2750_v56, %v2744_v50  ;;  %v2730_v37 = vadd.f32 %v3455_v27, %v2729_v48 }
 0x218   : > { %v2752_v49 = vadd.f32 %v2751_v29, %v2745_v40 }
 0x23e   : > { %v3444_v46 = vpop.f32.mrb[4].mxu0 }
 0x23f   : > { %v3377_v63 = vpack.c.bf16 %v3444_v46, %v3444_v46  ;;  %v2491_v57 = vpop.f32.mrb[5].mxu0  ;;  %v2567_v3 = vmul.f32 %v3444_v46, %v3444_v46 }
 0x240   : > { %v3375_v16 = vpack.c.bf16 %v2491_v57, %v2491_v57  ;;  %v2550_v55 = vadd.f32 %v2549_v20, %v2491_v57  ;;  %v2565_v43 = vmul.f32 %v2491_v57, %v2491_v57  ;;  %v3445_v54 = vpop.f32.mrb[6].mxu0 }
 0x241   : > { %2545 = vst.msk [vmem:[%s4767_s27 + $0x18] sm:$0xf] %vm2538_vm13, %v3377_v63  ;;  %v3378_v58 = vpack.c.bf16 %v3445_v54, %v3445_v54  ;;  %v2494_v59 = vpop.f32.mrb[7].mxu0  ;;  %v2568_v47 = vmul.f32 %v3445_v54, %v3445_v54 }
 0x242   : > { %2543 = vst.msk [vmem:[%s4767_s27 + $0x10] sm:$0xf] %vm2538_vm13, %v3375_v16  ;;  %v2572_v62 = vadd.f32 %v2571_v7, %v2565_v43  ;;  %v3376_v1 = vpack.c.bf16 %v2494_v59, %v2494_v59  ;;  %v2551_v0 = vadd.f32 %v2550_v55, %v2494_v59  ;;  %v2566_v61 = vmul.f32 %v2494_v59, %v2494_v59 }
 0x243   : > { %2546 = vst.msk [vmem:[%s4767_s27 + $0x1c] sm:$0xf] %vm2538_vm13, %v3378_v58 }
 0x244   : > { %2544 = vst.msk [vmem:[%s4767_s27 + $0x14] sm:$0xf] %vm2538_vm13, %v3376_v1  ;;  %v2552_v6 = vadd.f32 %v3444_v46, %v2551_v0  ;;  %v2573_v45 = vadd.f32 %v2572_v62, %v2566_v61 }
 0x246   : > { %v2553_v13 = vadd.f32 %v3445_v54, %v2552_v6  ;;  %v2574_v14 = vadd.f32 %v2573_v45, %v2567_v3 }
 0x248   : > { %v2575_v42 = vadd.f32 %v2574_v14, %v2568_v47  ;;  %v2554_v5 = vrot.slane %v2553_v13, 4 }
 0x24a   : > { %v2576_v32 = vrot.slane %v2575_v42, 4  ;;  %v2555_v21 = vadd.f32 %v2554_v5, %v2553_v13 }
 0x24c   : > { %v2577_v4 = vadd.f32 %v2576_v32, %v2575_v42  ;;  %v2556_v24 = vrot.slane %v2555_v21, 2 }
 0x24e   : > { %v3458_v8 = vpop.f32.mrb[4].mxu1  ;;  %v2578_v7 = vrot.slane %v2577_v4, 2  ;;  %v2557_v34 = vadd.f32 %v2556_v24, %v2555_v21 }
 0x24f   : > { %v3385_v15 = vpack.c.bf16 %v3458_v8, %v3458_v8  ;;  %v2673_v52 = vpop.f32.mrb[5].mxu1  ;;  %v2748_v23 = vmul.f32 %v3458_v8, %v3458_v8 }
 0x250   : > { %v3383_v41 = vpack.c.bf16 %v2673_v52, %v2673_v52  ;;  %v2731_v60 = vadd.f32 %v2730_v37, %v2673_v52  ;;  %v3459_v17 = vpop.f32.mrb[6].mxu1  ;;  %v2746_v28 = vmul.f32 %v2673_v52, %v2673_v52  ;;  %v2579_v44 = vadd.f32 %v2578_v7, %v2577_v4 }
 0x251   : > { %2726 = vst.msk [vmem:[%s4767_s27 + $0x38] sm:$0xf] %vm2538_vm13, %v3385_v15  ;;  %v3386_v18 = vpack.c.bf16 %v3459_v17, %v3459_v17  ;;  %v2676_v51 = vpop.f32.mrb[7].mxu1  ;;  %v2749_v33 = vmul.f32 %v3459_v17, %v3459_v17  ;;  %v2558_v2 = vrot.slane %v2557_v34, 1 }
 0x252   : > { %2724 = vst.msk [vmem:[%s4767_s27 + $0x30] sm:$0xf] %vm2538_vm13, %v3383_v41  ;;  %v3384_v19 = vpack.c.bf16 %v2676_v51, %v2676_v51  ;;  %v2732_v22 = vadd.f32 %v2731_v60, %v2676_v51  ;;  %v2753_v10 = vadd.f32 %v2752_v49, %v2746_v28  ;;  %v2747_v26 = vmul.f32 %v2676_v51, %v2676_v51 }
 0x253   : > { %2727 = vst.msk [vmem:[%s4767_s27 + $0x3c] sm:$0xf] %vm2538_vm13, %v3386_v18  ;;  %v2580_v50 = vrot.slane %v2579_v44, 1  ;;  %v2559_v56 = vadd.f32 %v2558_v2, %v2557_v34 }
 0x254   : > { %2725 = vst.msk [vmem:[%s4767_s27 + $0x34] sm:$0xf] %vm2538_vm13, %v3384_v19  ;;  %v2733_v11 = vadd.f32 %v3458_v8, %v2732_v22  ;;  %v2754_v31 = vadd.f32 %v2753_v10, %v2747_v26 }
 0x255   : > { %v2581_v49 = vadd.f32 %v2580_v50, %v2579_v44 }
 0x256   : > { %v2734_v35 = vadd.f32 %v3459_v17, %v2733_v11  ;;  %v2755_v53 = vadd.f32 %v2754_v31, %v2748_v23 }
 0x258   : > { %v2735_v20 = vrot.slane %v2734_v35, 4  ;;  %v2756_v36 = vadd.f32 %v2755_v53, %v2749_v33 }
 0x25a   : > { %v2736_v30 = vadd.f32 %v2735_v20, %v2734_v35  ;;  %v2757_v39 = vrot.slane %v2756_v36, 4 }
 0x25c   : > { %v2737_v27 = vrot.slane %v2736_v30, 2  ;;  %v2758_v12 = vadd.f32 %v2757_v39, %v2756_v36 }
 0x25e   : > { %v2738_v25 = vadd.f32 %v2737_v27, %v2736_v30  ;;  %v2759_v38 = vrot.slane %v2758_v12, 2 }
 0x260   : > { %v2739_v9 = vrot.slane %v2738_v25, 1  ;;  %v2760_v48 = vadd.f32 %v2759_v38, %v2758_v12 }
 0x262   : > { %v2740_v40 = vadd.f32 %v2739_v9, %v2738_v25  ;;  %v2761_v29 = vrot.slane %v2760_v48, 1 }
 0x264   : > { %v4801_v37 = vadd.f32 %v2740_v40, %v2559_v56  ;;  %v2762_v46 = vadd.f32 %v2761_v29, %v2760_v48 }
 0x266   : > { %v4803_v63 = vadd.f32 %v2762_v46, %v2581_v49 }
 0x27e   : > { %v3468_v57 = vpop.f32.mrb[8].mxu0 }
 0x27f   : > { %v3389_v16 = vpack.c.bf16 %v3468_v57, %v3468_v57  ;;  %v2838_v55 = vpop.f32.mrb[9].mxu0  ;;  %v2925_v3 = vmul.f32 %v3468_v57, %v3468_v57 }
 0x280   : > { %v3387_v43 = vpack.c.bf16 %v2838_v55, %v2838_v55  ;;  %v3469_v54 = vpop.f32.mrb[10].mxu0  ;;  %v2923_v62 = vmul.f32 %v2838_v55, %v2838_v55 }
 0x281   : > { %2903 = vst.msk [vmem:[%s4767_s27 + $0x48] sm:$0xf] %vm2538_vm13, %v3389_v16  ;;  %v3390_v58 = vpack.c.bf16 %v3469_v54, %v3469_v54  ;;  %v2841_v59 = vpop.f32.mrb[11].mxu0  ;;  %v2926_v47 = vmul.f32 %v3469_v54, %v3469_v54 }
 0x282   : > { %2901 = vst.msk [vmem:[%s4767_s27 + $0x40] sm:$0xf] %vm2538_vm13, %v3387_v43  ;;  %v3388_v1 = vpack.c.bf16 %v2841_v59, %v2841_v59  ;;  %v2909_v0 = vadd.f32 %v2841_v59, %v2838_v55  ;;  %v2924_v61 = vmul.f32 %v2841_v59, %v2841_v59 }
 0x283   : > { %2904 = vst.msk [vmem:[%s4767_s27 + $0x4c] sm:$0xf] %vm2538_vm13, %v3390_v58 }
 0x284   : > { %2902 = vst.msk [vmem:[%s4767_s27 + $0x44] sm:$0xf] %vm2538_vm13, %v3388_v1  ;;  %v2910_v6 = vadd.f32 %v3468_v57, %v2909_v0  ;;  %v2931_v45 = vadd.f32 %v2924_v61, %v2923_v62 }
 0x286   : > { %v2932_v13 = vadd.f32 %v2931_v45, %v2925_v3  ;;  %v2911_v14 = vadd.f32 %v3469_v54, %v2910_v6 }
 0x288   : > { %v2933_v42 = vadd.f32 %v2932_v13, %v2926_v47 }
 0x28e   : > { %v3482_v5 = vpop.f32.mrb[8].mxu1 }
 0x28f   : > { %v3397_v8 = vpack.c.bf16 %v3482_v5, %v3482_v5  ;;  %v3019_v15 = vpop.f32.mrb[9].mxu1  ;;  %v3106_v21 = vmul.f32 %v3482_v5, %v3482_v5 }
 0x290   : > { %v3395_v52 = vpack.c.bf16 %v3019_v15, %v3019_v15  ;;  %v3483_v41 = vpop.f32.mrb[10].mxu1  ;;  %v3104_v32 = vmul.f32 %v3019_v15, %v3019_v15 }
 0x291   : > { %3084 = vst.msk [vmem:[%s4767_s27 + $0x68] sm:$0xf] %vm2538_vm13, %v3397_v8  ;;  %v3398_v60 = vpack.c.bf16 %v3483_v41, %v3483_v41  ;;  %v3022_v17 = vpop.f32.mrb[11].mxu1  ;;  %v3107_v10 = vmul.f32 %v3483_v41, %v3483_v41 }
 0x292   : > { %3082 = vst.msk [vmem:[%s4767_s27 + $0x60] sm:$0xf] %vm2538_vm13, %v3395_v52  ;;  %v3396_v28 = vpack.c.bf16 %v3022_v17, %v3022_v17  ;;  %v3090_v18 = vadd.f32 %v3022_v17, %v3019_v15  ;;  %v3105_v51 = vmul.f32 %v3022_v17, %v3022_v17 }
 0x293   : > { %3085 = vst.msk [vmem:[%s4767_s27 + $0x6c] sm:$0xf] %vm2538_vm13, %v3398_v60 }
 0x294   : > { %3083 = vst.msk [vmem:[%s4767_s27 + $0x64] sm:$0xf] %vm2538_vm13, %v3396_v28  ;;  %v3091_v19 = vadd.f32 %v3482_v5, %v3090_v18  ;;  %v3112_v22 = vadd.f32 %v3105_v51, %v3104_v32 }
 0x296   : > { %v3113_v26 = vadd.f32 %v3112_v22, %v3106_v21  ;;  %v3092_v11 = vadd.f32 %v3483_v41, %v3091_v19 }
 0x298   : > { %v3114_v4 = vadd.f32 %v3113_v26, %v3107_v10 }
 0x2b8   : > { %v3472_v23 = vpop.f32.mrb[12].mxu0 }
 0x2b9   : > { %v3393_v31 = vpack.c.bf16 %v3472_v23, %v3472_v23  ;;  %v2854_v24 = vpop.f32.mrb[13].mxu0  ;;  %v2929_v44 = vmul.f32 %v3472_v23, %v3472_v23 }
 0x2ba   : > { %v3391_v35 = vpack.c.bf16 %v2854_v24, %v2854_v24  ;;  %v2912_v33 = vadd.f32 %v2911_v14, %v2854_v24  ;;  %v2927_v53 = vmul.f32 %v2854_v24, %v2854_v24  ;;  %v3473_v20 = vpop.f32.mrb[14].mxu0 }
 0x2bb   : > { %2907 = vst.msk [vmem:[%s4767_s27 + $0x58] sm:$0xf] %vm2538_vm13, %v3393_v31  ;;  %v3394_v7 = vpack.c.bf16 %v3473_v20, %v3473_v20  ;;  %v2857_v36 = vpop.f32.mrb[15].mxu0  ;;  %v2930_v38 = vmul.f32 %v3473_v20, %v3473_v20 }
 0x2bc   : > { %2905 = vst.msk [vmem:[%s4767_s27 + $0x50] sm:$0xf] %vm2538_vm13, %v3391_v35  ;;  %v2934_v34 = vadd.f32 %v2933_v42, %v2927_v53  ;;  %v3392_v30 = vpack.c.bf16 %v2857_v36, %v2857_v36  ;;  %v2913_v39 = vadd.f32 %v2912_v33, %v2857_v36  ;;  %v2928_v27 = vmul.f32 %v2857_v36, %v2857_v36 }
 0x2bd   : > { %2908 = vst.msk [vmem:[%s4767_s27 + $0x5c] sm:$0xf] %vm2538_vm13, %v3394_v7 }
 0x2be   : > { %2906 = vst.msk [vmem:[%s4767_s27 + $0x54] sm:$0xf] %vm2538_vm13, %v3392_v30  ;;  %v2914_v12 = vadd.f32 %v3472_v23, %v2913_v39  ;;  %v2935_v2 = vadd.f32 %v2934_v34, %v2928_v27 }
 0x2c0   : > { %v2915_v9 = vadd.f32 %v3473_v20, %v2914_v12  ;;  %v2936_v50 = vadd.f32 %v2935_v2, %v2929_v44 }
 0x2c2   : > { %v3486_v25 = vpop.f32.mrb[12].mxu1  ;;  %v2916_v57 = vrot.slane %v2915_v9, 4  ;;  %v2937_v16 = vadd.f32 %v2936_v50, %v2930_v38 }
 0x2c3   : > { %v3401_v48 = vpack.c.bf16 %v3486_v25, %v3486_v25  ;;  %v3035_v56 = vpop.f32.mrb[13].mxu1  ;;  %v3110_v61 = vmul.f32 %v3486_v25, %v3486_v25 }
 0x2c4   : > { %v3399_v40 = vpack.c.bf16 %v3035_v56, %v3035_v56  ;;  %v3093_v29 = vadd.f32 %v3092_v11, %v3035_v56  ;;  %v3108_v49 = vmul.f32 %v3035_v56, %v3035_v56  ;;  %v3487_v46 = vpop.f32.mrb[14].mxu1  ;;  %v2917_v1 = vadd.f32 %v2916_v57, %v2915_v9 }
 0x2c5   : > { %3088 = vst.msk [vmem:[%s4767_s27 + $0x78] sm:$0xf] %vm2538_vm13, %v3401_v48  ;;  %v3402_v55 = vpack.c.bf16 %v3487_v46, %v3487_v46  ;;  %v3038_v43 = vpop.f32.mrb[15].mxu1  ;;  %v2938_v0 = vrot.slane %v2937_v16, 4 }
 0x2c6   : > { %3086 = vst.msk [vmem:[%s4767_s27 + $0x70] sm:$0xf] %vm2538_vm13, %v3399_v40  ;;  %v3115_v54 = vadd.f32 %v3114_v4, %v3108_v49  ;;  %v3400_v58 = vpack.c.bf16 %v3038_v43, %v3038_v43  ;;  %v3094_v59 = vadd.f32 %v3093_v29, %v3038_v43  ;;  %v3109_v62 = vmul.f32 %v3038_v43, %v3038_v43 }
 0x2c7   : > { %3089 = vst.msk [vmem:[%s4767_s27 + $0x7c] sm:$0xf] %vm2538_vm13, %v3402_v55  ;;  %v2918_v45 = vrot.slane %v2917_v1, 2  ;;  %v2939_v47 = vadd.f32 %v2938_v0, %v2937_v16 }
 0x2c8   : > { %3087 = vst.msk [vmem:[%s4767_s27 + $0x74] sm:$0xf] %vm2538_vm13, %v3400_v58  ;;  %v3095_v3 = vadd.f32 %v3486_v25, %v3094_v59  ;;  %v3116_v6 = vadd.f32 %v3115_v54, %v3109_v62 }
 0x2c9   : > { %3668 = shalt.err (!%p3665_p7)
}
 0x2ca   : > { %s3669_s9 = scalar_lea.hbm %s4836_s22, 2048  ;;  %s3673_s5 = scalar_lea.hbm %s4924_s2, 4096 }
 0x2cb   : > { %p3670_p9 = scmp.ne.s32.totalorder %s4836_s22, %s3669_s9  ;;  %p3674_p5 = scmp.lt.u32.totalorder %s4836_s22, %s4924_s2 }
 0x2cc   : > { %p3675_p11 = scmp.lt.u32.totalorder %s3673_s5, %s3669_s9  ;;  %p3677_p4 = scmp.lt.u32.totalorder %s3669_s9, %s4836_s22 }
 0x2cd   : > { %p3671_p1 = pnand %p3670_p9, %p3889_p12 }
 0x2ce   : > { %p3676_p2 = por %p3675_p11, %p3674_p5 }
 0x2cf   : > { %p3672_p0 = pneg %p3671_p1 }
 0x2d0   : > { %p3678_p6 = por %p3677_p4, %p3676_p2 }
 0x2d2   : > { %p3679_p8 = pnand %p3678_p6, %p3672_p0 }
 0x2d4   : > { %3682 = shalt.err (!%p3679_p8)
}
 0x2d5   : > { %s3773_s28 = smov 64   ;;  %v3111_v13 = vmul.f32 %v3487_v46, %v3487_v46  ;;  %v3096_v14 = vadd.f32 %v3487_v46, %v3095_v3  ;;  %v3117_v42 = vadd.f32 %v3116_v6, %v3110_v61  ;;  %v2919_v5 = vadd.f32 %v2918_v45, %v2917_v1  ;;  %s3134_s26 = scalar_lea.sflag [#allocation11], %s3940_s6 }
 0x2d6   : > { %3498 = dma.vmem_to_hbm [thread:$0]  (%p3889_p12), %s4840_s23, 2048, %s4836_s22, %s3129_s7, %s3773_s28, %s3773_s28, %s3764_s18   ;;  %v2940_v8 = vrot.slane %v2939_v47, 2 }
 0x2d7   : > { %v3097_v15 = vrot.slane %v3096_v14, 4  ;;  %v3118_v52 = vadd.f32 %v3117_v42, %v3111_v13  ;;  %v2920_v41 = vrot.slane %v2919_v5, 1  ;;  %s3286_s18 = sshll.u32 %s3940_s6, 1  ;;  %s3367_s23 = sshll.u32 %s3816_s16, 5 }
 0x2d8   : > { %v2941_v60 = vadd.f32 %v2940_v8, %v2939_v47  ;;  %s214_s29 = scalar_lea.vmem [#allocation10], %s3286_s18  ;;  %s4878_s10 = scalar_lea.hbm %s4925_s3, %s3367_s23 }
 0x2d9   : > { %v3098_v17 = vadd.f32 %v3097_v15, %v3096_v14  ;;  %v3119_v32 = vrot.slane %v3118_v52, 4  ;;  %v2921_v28 = vadd.f32 %v2920_v41, %v2919_v5  ;;  %s3163_s30 = sshll.u32 %s214_s29, 4  ;;  %s3774_s16 = smov [#allocation10]   ;;  %s4880_s30 = int_to_ptr.vmem [resolvable:$true] %s3163_s30 }
 0x2da   : > { %v2942_v18 = vrot.slane %v2941_v60, 1  ;;  %s3683_s20 = scalar_lea.vmem %s4880_s30, 32  ;;  %s3687_s8 = sshll.u32 %s3774_s16, 4  ;;  %s3688_s8 = int_to_ptr.vmem [resolvable:$false] %s3687_s8 }
 0x2db   : > { %v3099_v51 = vrot.slane %v3098_v17, 2  ;;  %v3120_v21 = vadd.f32 %v3119_v32, %v3118_v52  ;;  %v2922_v19 = vadd.f32 %v2921_v28, %v4801_v37  ;;  %p3684_p10 = scmp.ne.s32.totalorder %s4880_s30, %s3683_s20  ;;  %s3689_s9 = scalar_lea.vmem %s3688_s8, 64 }
 0x2dc   : > { %v2943_v22 = vadd.f32 %v2942_v18, %v2941_v60  ;;  %p3690_p7 = scmp.lt.s32.totalorder %s4880_s30, %s3688_s8  ;;  %p3691_p9 = scmp.lt.s32.totalorder %s3689_s9, %s3683_s20 }
 0x2dd   : > { %v3100_v10 = vadd.f32 %v3099_v51, %v3098_v17  ;;  %v3121_v26 = vrot.slane %v3120_v21, 2  ;;  %p3685_p13 = pnand %p3684_p10, %p3889_p12 }
 0x2de   : > { %v2944_v11 = vadd.f32 %v2943_v22, %v4803_v63  ;;  %p3692_p1 = por %p3691_p9, %p3690_p7 }
 0x2df   : > { %v3101_v4 = vrot.slane %v3100_v10, 1  ;;  %v3122_v23 = vadd.f32 %v3121_v26, %v3120_v21  ;;  %p3686_p3 = pneg %p3685_p13 }
 0x2e1   : > { %v3102_v31 = vadd.f32 %v3101_v4, %v3100_v10  ;;  %v3123_v24 = vrot.slane %v3122_v23, 1  ;;  %p3693_p0 = pnand %p3692_p1, %p3686_p3 }
 0x2e3   : > { %v3124_v35 = vadd.f32 %v3123_v24, %v3122_v23  ;;  %v3103_v33 = vadd.f32 %v3102_v31, %v2922_v19 }
 0x2e5   : > { %v3125_v53 = vadd.f32 %v3124_v35, %v2944_v11  ;;  %3126 = vst [vmem:[%s214_s29] sm:$0x1] %v3103_v33 }
 0x2e7   : > { %3127 = vst [vmem:[%s214_s29 + $0x1] sm:$0x1] %v3125_v53 }
 0x2e8   : > { %3696 = shalt.err (!%p3693_p0)
}
 0x2e9   : > { %s3697_s6 = scalar_lea.hbm %s4878_s10, 32  ;;  %s3701_s5 = scalar_lea.hbm %s4925_s3, 64 }
 0x2ea   : > { %p3698_p5 = scmp.ne.s32.totalorder %s4878_s10, %s3697_s6  ;;  %p3702_p4 = scmp.lt.u32.totalorder %s4878_s10, %s4925_s3 }
 0x2eb   : > { %p3703_p6 = scmp.lt.u32.totalorder %s3701_s5, %s3697_s6  ;;  %p3705_p10 = scmp.lt.u32.totalorder %s3697_s6, %s4878_s10 }
 0x2ec   : > { %p3699_p11 = pnand %p3698_p5, %p3889_p12 }
 0x2ed   : > { %p3704_p8 = por %p3703_p6, %p3702_p4 }
 0x2ee   : > { %p3700_p2 = pneg %p3699_p11 }
 0x2ef   : > { %p3706_p13 = por %p3705_p10, %p3704_p8 }
 0x2f1   : > { %p3707_p3 = pnand %p3706_p13, %p3700_p2 }
 0x2f3   : > { %3710 = shalt.err (!%p3707_p3)
}
 0x2f4   : > { %3499 = dma.vmem_to_hbm [thread:$0]  (%p3889_p12), %s4880_s30, 32, %s4878_s10, %s3134_s26  }
 0x2f5 PF: > { %s3175_s28 = sand.u32 1, %s3745_s12   ;;  %p4940_p7 = scmp.ne.s32.totalorder %s4930_s19, 0 }
 0x2f6   : > { %p4941_p9 = scmp.ge.s32.totalorder %s3757_s15, 2  ;;  %s3176_s18 = scalar_lea.sflag [#allocation6], %s3175_s28 }
 0x2f8   : > { %p3511_p1 = pnand %p4941_p9, %p4940_p7 }
 0x2fa   : > { %3736 = dma.done.wait (!%p3511_p1), %s3176_s18, 2048  }
 0x2fb   : > { %3738 = vsyncadd (!%p3511_p1), %s3176_s18, 4294965248  ;;  %s3185_s23 = scalar_lea.sflag [#allocation11], %s3175_s28 }
 0x2fc   : > { %3740 = dma.done.wait (!%p3511_p1), %s3185_s23, 32  }
 0x2fd   : > { %3742 = vsyncadd (!%p3511_p1), %s3185_s23, 4294967264  ;;  %p21_p12 = scmp.ge.s32.totalorder %s3851_s24, 4   ;;  %s4942_s12 = smov %s3749_s13 }
 0x2fe   : > { %s4943_s13 = smov %s3753_s14  ;;  %s4944_s14 = smov %s3885_s17 }
 0x2ff   : > { %s4945_s15 = smov %s3851_s24  ;;  %23 = sbr.rel (!%p21_p12) target bundleno = 8 (0x8), region = 100 }
 0x306   :  { %3190 = vsyncpa [#allocation5], 1 }
 0x307   :  { %3192 = vsyncpa [#allocation5 + $0x1], 1 }
 0x308   :  { %3193 = vsyncpa [#allocation8], 1 }
 0x309   :  { %3194 = vsyncpa [#allocation6], 1 }
 0x30a   :  { %3196 = vsyncpa [#allocation6 + $0x1], 1 }
 0x30b   :  { %3197 = vsyncpa [#allocation11], 1 }
 0x30c   :  { %3199 = vsyncpa [#allocation11 + $0x1], 1 }

</bundles_post_ra>
